<compile_context>
chip_gen: v7x
topology: tpu7x:2x2x1
jax: 0.10.0
libtpu: 0.0.40
codegen_flags: <defaults>
</compile_context>

<pallas_src>
import jax
import jax.numpy as jnp
from jax import lax
from jax.experimental import pallas as pl
from jax.experimental.pallas import tpu as pltpu


def _make_kernel(N, K, K2, NN, NN_pad, rblk, nblk, B_TILE):
    inv_nn = 1.0 / float(NN)
    n_row_chunks = NN_pad // 128

    def kernel(p_ref, ag_ref, v0_ref, m_ref, out_ref,
               acc_ref, row_ref, qrow_ref, x0col_ref, t1col_ref):
        # p_ref   : SMEM (7,)  = [a/B, b/B, c, wq, bq, wk, bk]   (true-B mean folded in)
        # ag_ref  : VMEM (N, N)
        # v0_ref  : VMEM (B_TILE, N, K)    -- one batch tile per grid step
        # m_ref   : VMEM (B_TILE, K2, N)   -- one batch tile per grid step
        # out_ref : VMEM (1, NN_pad)       -- lane-dense flat output (padded)
        # acc_ref : VMEM (N, N) f32        -- batch accumulator, then x0
        # row_ref : VMEM (1, NN_pad) f32   -- flattened x0 (row / lane layout)
        # qrow_ref: VMEM (1, NN_pad) f32   -- masked Q in lane layout
        # x0col_ref, t1col_ref: VMEM (NN_pad, 1) f32 -- sublane-layout vectors
        step = pl.program_id(0)
        nsteps = pl.num_programs(0)

        a_s = p_ref[0]   # Ag_param[0,0] / B
        b_s = p_ref[1]   # Ag_param[0,1] / B
        c_s = p_ref[2]   # Ag_param[0,2]
        wq = p_ref[3]
        bq = p_ref[4]
        wk = p_ref[5]
        bk = p_ref[6]

        @pl.when(step == 0)
        def _init():
            acc_ref[...] = jnp.zeros_like(acc_ref)

        # ---------- batch-tiled accumulation phase (review #1) ----------
        def batch_body(t, carry):
            vb = v0_ref[t]                               # (N, K)
            mb = m_ref[t]                                # (K2, N)
            cor_d = lax.dot_general(vb, vb, (((1,), (1,)), ((), ())),
                                    preferred_element_type=jnp.float32) * (1.0 / K)
            cor_p = lax.dot_general(mb, mb, (((0,), (0,)), ((), ())),
                                    preferred_element_type=jnp.float32) * (1.0 / K2)
            return carry + a_s * jnp.tanh(cor_d) + b_s * jnp.tanh(cor_p)

        part = lax.fori_loop(0, B_TILE, batch_body,
                             jnp.zeros((N, N), jnp.float32), unroll=True)
        acc_ref[...] += part

        # ---------- finalize: upCor_s / downCor_s chain (last step only) ----------
        @pl.when(step == nsteps - 1)
        def _finalize():
            x0m = acc_ref[...] + ag_ref[...]             # x0 (N, N)

            # Flatten x0 row-major into a lane-dense (1, NN_pad) row; pad lanes 0.
            # (N static sub-block stores; done once per call, O(N).)
            row_ref[...] = jnp.zeros_like(row_ref)
            for i in range(N):
                row_ref[:, i * N:(i + 1) * N] = x0m[i:i + 1, :]
            x0row = row_ref[...]                         # (1, NN_pad), pad lanes 0

            lane_valid = lax.broadcasted_iota(jnp.int32, (1, NN_pad), 1) < NN
            # Q in lane layout, pad lanes forced to 0 (they would otherwise leak
            # sigmoid(bk) into the contractions).
            qrow_ref[...] = jnp.where(lane_valid,
                                      jax.nn.sigmoid(wk * x0row + bk), 0.0)

            # Exact row -> column relayout via chunked identity matmuls.
            eye128 = (lax.broadcasted_iota(jnp.int32, (128, 128), 0)
                      == lax.broadcasted_iota(jnp.int32, (128, 128), 1)
                      ).astype(jnp.float32)

            def row_to_col(row_vec, col_ref):
                for c in range(n_row_chunks):            # static, NN_pad/128 chunks
                    piece = lax.dot_general(
                        eye128, row_vec[:, c * 128:(c + 1) * 128],
                        (((1,), (1,)), ((), ())),
                        precision=lax.Precision.HIGHEST,
                        preferred_element_type=jnp.float32)      # (128, 1)
                    col_ref[c * 128:(c + 1) * 128, :] = piece

            row_to_col(x0row, x0col_ref)                 # x0 in sublane layout

            cq = wq * inv_nn                             # /NN folded into conv scale
            ck = wk * inv_nn

            # Atte = outer(P, Q)/NN is rank-1: rebuild (rblk, NN_pad) blocks with a
            # VPU broadcast, sigmoid on the EUP while resident, contract on the MXU.
            # All per-block dynamic slices are sublane slices of column scratches.
            def p1_body(blk, t1_acc):
                s0 = pl.multiple_of(blk * rblk, 128)
                xc = x0col_ref[pl.ds(s0, rblk), :]                       # (rblk, 1)
                pb = jax.nn.sigmoid(wq * xc + bq)                        # P chunk (col)
                wcol = jax.nn.sigmoid(wk * xc + bk)                      # Q chunk (weights)
                ids = s0 + lax.broadcasted_iota(jnp.int32, (rblk, 1), 0)
                wcol = jnp.where(ids < NN, wcol, 0.0)                    # mask pad rows
                p1 = jax.nn.sigmoid(cq * (pb * qrow_ref[...]) + bq)      # (rblk, NN_pad)
                return t1_acc + lax.dot_general(
                    wcol, p1, (((0,), (0,)), ((), ())),
                    preferred_element_type=jnp.float32)

            t1_acc = lax.fori_loop(0, nblk, p1_body,
                                   jnp.zeros((1, NN_pad), jnp.float32))
            t1row = jnp.where(lane_valid, jnp.tanh(t1_acc * inv_nn), 0.0)
            row_to_col(t1row, t1col_ref)                 # t1 weights in sublane layout

            def p2_body(blk, in_acc):
                s0 = pl.multiple_of(blk * rblk, 128)
                xc = x0col_ref[pl.ds(s0, rblk), :]
                pb = jax.nn.sigmoid(wq * xc + bq)
                wcol = t1col_ref[pl.ds(s0, rblk), :]                     # already masked
                q1 = jax.nn.sigmoid(ck * (pb * qrow_ref[...]) + bk)      # (rblk, NN_pad)
                return in_acc + lax.dot_general(
                    wcol, q1, (((0,), (0,)), ((), ())),
                    preferred_element_type=jnp.float32)

            in_acc = lax.fori_loop(0, nblk, p2_body,
                                   jnp.zeros((1, NN_pad), jnp.float32))
            inner = jnp.tanh(in_acc * inv_nn)            # (1, NN_pad)

            # outer downCor_s(x0, P, inner): s = tanh(<x0, P>/NN)  (pad lanes of
            # x0row are 0, so no mask needed).
            pv = jax.nn.sigmoid(wq * x0row + bq)
            s_val = jnp.tanh(jnp.sum(x0row * pv, keepdims=True) * inv_nn)  # (1, 1)
            outv = jnp.tanh(inner * (s_val * inv_nn))

            # out = Ag_param[0,2] * out + x0  (flat; wrapper slices [:NN] + reshapes)
            out_ref[...] = c_s * outv + x0row

    return kernel


def label_cor_module_s(Ag, V0, M, Ag_param, conv_params, *, b_tile=8):
    """Fused forward of labelCorModule_s.

    conv_params = [wq, bq, wk, bk]: the 1x1x1x1 query_conv / key_conv of upCor_s.
    Returns (1, 1, N, N) float32, matching the torch module.
    """
    Ag = Ag.astype(jnp.float32)
    V0 = V0.astype(jnp.float32)
    M = M.astype(jnp.float32)
    B, N, K = V0.shape
    K2 = M.shape[1]
    NN = N * N
    NN_pad = ((NN + 127) // 128) * 128               # lane-dense internal width

    # rblk: largest multiple of 128 that divides NN_pad with a (rblk, NN_pad) f32
    # block <= ~4 MiB  (VMEM-budget cap, flat across v5e/v6e/v7x).
    units = NN_pad // 128
    budget_units = max(1, (4 * 1024 * 1024) // (128 * NN_pad * 4))
    m_pick = 1
    for cand in range(1, units + 1):
        if units % cand == 0 and cand <= budget_units:
            m_pick = cand
    rblk = 128 * m_pick
    nblk = NN_pad // rblk

    # Batch tiling: pad B with zero slices (they contribute tanh(0)=0; the true-B
    # mean is folded into the scales below), B_TILE slices per grid step.
    B_TILE = max(1, int(b_tile))
    B_pad = ((B + B_TILE - 1) // B_TILE) * B_TILE
    if B_pad != B:
        V0 = jnp.concatenate([V0, jnp.zeros((B_pad - B, N, K), V0.dtype)], axis=0)
        M = jnp.concatenate([M, jnp.zeros((B_pad - B, K2, N), M.dtype)], axis=0)

    ap = Ag_param.reshape(-1).astype(jnp.float32)
    cp = conv_params.reshape(-1).astype(jnp.float32)
    params = jnp.stack([ap[0] / B, ap[1] / B, ap[2], cp[0], cp[1], cp[2], cp[3]])

    kernel = _make_kernel(N, K, K2, NN, NN_pad, rblk, nblk, B_TILE)

    grid_spec = pltpu.PrefetchScalarGridSpec(
        num_scalar_prefetch=1,                           # params -> SMEM
        grid=(B_pad // B_TILE,),                         # batch tiles
        in_specs=[
            pl.BlockSpec((N, N), lambda s, p: (0, 0)),               # Ag
            pl.BlockSpec((B_TILE, N, K), lambda s, p: (s, 0, 0)),    # V0 tile / step
            pl.BlockSpec((B_TILE, K2, N), lambda s, p: (s, 0, 0)),   # M tile / step
        ],
        out_specs=pl.BlockSpec((1, NN_pad), lambda s, p: (0, 0)),    # lane-dense slab
        scratch_shapes=[
            pltpu.VMEM((N, N), jnp.float32),             # batch accumulator / x0
            pltpu.VMEM((1, NN_pad), jnp.float32),        # x0 flat row
            pltpu.VMEM((1, NN_pad), jnp.float32),        # masked Q row
            pltpu.VMEM((NN_pad, 1), jnp.float32),        # x0 column layout
            pltpu.VMEM((NN_pad, 1), jnp.float32),        # t1 column layout
        ],
    )

    outf = pl.pallas_call(
        kernel,
        out_shape=jax.ShapeDtypeStruct((1, NN_pad), jnp.float32),
        grid_spec=grid_spec,
        compiler_params=pltpu.CompilerParams(
            dimension_semantics=("arbitrary",),          # batch axis carries the acc
            # 32 MiB is safe on v5e/v6e/v7x; can be raised (64-96 MiB) on v6e for
            # larger B_TILE / rblk at big production shapes.
            vmem_limit_bytes=32 * 1024 * 1024,
        ),
    )(params, Ag, V0, M)

    return outf[:, :NN].reshape(1, 1, N, N)


def _reference(Ag, V0, M, Ag_param, conv_params):
    """Pure-JAX transcription of the PyTorch forward, for verification."""
    wq, bq, wk, bk = (conv_params[i] for i in range(4))
    B, N, K = V0.shape
    K2 = M.shape[1]
    NN = N * N
    cor_D = jnp.einsum('bnk,bmk->bnm', V0, V0) / K
    cor_P = jnp.einsum('bkn,bkm->bnm', M, M) / K2
    x0 = Ag + jnp.mean(Ag_param[0, 0] * jnp.tanh(cor_D)
                       + Ag_param[0, 1] * jnp.tanh(cor_P), axis=0)
    x0f = x0.reshape(NN)
    Pv = jax.nn.sigmoid(wq * x0f + bq)
    Qv = jax.nn.sigmoid(wk * x0f + bk)
    Atte = jnp.outer(Pv, Qv) / NN
    P1 = jax.nn.sigmoid(wq * Atte + bq)
    Q1 = jax.nn.sigmoid(wk * Atte + bk)
    t1 = jnp.tanh(jnp.dot(Qv, P1) / NN)
    inner = jnp.tanh(jnp.dot(t1, Q1) / NN)
    s = jnp.tanh(jnp.dot(x0f, Pv) / NN)
    outv = jnp.tanh(s * inner / NN)
    final = Ag_param[0, 2] * outv + x0f
    return final.reshape(1, 1, N, N)


if __name__ == "__main__":
    B, N, K, K2 = 2, 8, 16, 16   # small shapes; NN = 64 (internally padded to 128)

    key = jax.random.PRNGKey(0)
    k1, k2, k3, k4 = jax.random.split(key, 4)
    Ag = jax.random.normal(k1, (N, N), dtype=jnp.float32)
    V0 = jax.random.normal(k2, (B, N, K), dtype=jnp.float32)
    M = jax.random.normal(k3, (B, K2, N), dtype=jnp.float32)
    Ag_param = jax.random.normal(k4, (1, 3), dtype=jnp.float32)
    # deterministic 1x1 conv params for upCor_s (query_conv / key_conv)
    conv_params = jnp.array([0.7, 0.1, -0.4, 0.05], dtype=jnp.float32)

    out = jax.block_until_ready(label_cor_module_s(Ag, V0, M, Ag_param, conv_params))
    ref = jax.block_until_ready(_reference(Ag, V0, M, Ag_param, conv_params))

    assert out.shape == (1, 1, N, N)
    err = float(jnp.max(jnp.abs(out - ref)))
    assert err < 1e-2, err
    print("KERNEL_OK")
</pallas_src>

<mosaic_0001>
module attributes {stable_mosaic.version = 11 : i64} {
  func.func @kernel(%arg0: i32, %arg1: memref<7xf32, #tpu.memory_space<smem>>, %arg2: memref<8x8xf32, #tpu.memory_space<vmem>>, %arg3: memref<8x8x16xf32, #tpu.memory_space<vmem>>, %arg4: memref<8x16x8xf32, #tpu.memory_space<vmem>>, %arg5: memref<1x128xf32, #tpu.memory_space<vmem>>, %arg6: memref<8x8xf32, #tpu.memory_space<vmem>>, %arg7: memref<1x128xf32, #tpu.memory_space<vmem>>, %arg8: memref<1x128xf32, #tpu.memory_space<vmem>>, %arg9: memref<128x1xf32, #tpu.memory_space<vmem>>, %arg10: memref<128x1xf32, #tpu.memory_space<vmem>>) attributes {dimension_semantics = [#tpu.dimension_semantics<arbitrary>], iteration_bounds = array<i64: 1>, scalar_prefetch = 1 : i64, scratch_operands = 5 : i64, tpu.core_type = #tpu.core_type<tc>, window_params = [{pipeline_mode = #tpu.pipeline_mode<synchronous>, transform_indices = @transform_0, window_bounds = array<i64: 8, 8>}, {transform_indices = @transform_1, window_bounds = array<i64: 8, 8, 16>}, {transform_indices = @transform_2, window_bounds = array<i64: 8, 16, 8>}, {pipeline_mode = #tpu.pipeline_mode<synchronous>, transform_indices = @transform_3, window_bounds = array<i64: 1, 128>}]} {
    %c0 = arith.constant 0 : index
    %0 = memref.load %arg1[%c0] : memref<7xf32, #tpu.memory_space<smem>>
    %c1 = arith.constant 1 : index
    %1 = memref.load %arg1[%c1] : memref<7xf32, #tpu.memory_space<smem>>
    %c2 = arith.constant 2 : index
    %2 = memref.load %arg1[%c2] : memref<7xf32, #tpu.memory_space<smem>>
    %c3 = arith.constant 3 : index
    %3 = memref.load %arg1[%c3] : memref<7xf32, #tpu.memory_space<smem>>
    %c4 = arith.constant 4 : index
    %4 = memref.load %arg1[%c4] : memref<7xf32, #tpu.memory_space<smem>>
    %c5 = arith.constant 5 : index
    %5 = memref.load %arg1[%c5] : memref<7xf32, #tpu.memory_space<smem>>
    %c6 = arith.constant 6 : index
    %6 = memref.load %arg1[%c6] : memref<7xf32, #tpu.memory_space<smem>>
    %c0_i32 = arith.constant 0 : i32
    %7 = arith.cmpi eq, %arg0, %c0_i32 : i32
    %8 = arith.extui %7 : i1 to i32
    %c0_i32_0 = arith.constant 0 : i32
    %9 = arith.cmpi ne, %8, %c0_i32_0 : i32
    scf.if %9 {
      %cst_72 = arith.constant 0.000000e+00 : f32
      %177 = vector.broadcast %cst_72 : f32 to vector<8x8xf32>
      %c0_73 = arith.constant 0 : index
      %c0_74 = arith.constant 0 : index
      %178 = vector.load %arg6[%c0_73, %c0_74] : memref<8x8xf32, #tpu.memory_space<vmem>>, vector<8x8xf32>
      tpu.vector_store %arg6[%c0_73, %c0_74], %177 {strides = array<i32>} : memref<8x8xf32, #tpu.memory_space<vmem>>, vector<8x8xf32>,
    } else {
    }
    %cst = arith.constant 0.000000e+00 : f32
    %10 = vector.broadcast %cst : f32 to vector<8x8xf32>
    %c0_i32_1 = arith.constant 0 : i32
    %11 = arith.index_cast %c0_i32_1 : i32 to index
    %c0_2 = arith.constant 0 : index
    %c0_3 = arith.constant 0 : index
    %12 = vector.load %arg3[%11, %c0_2, %c0_3] : memref<8x8x16xf32, #tpu.memory_space<vmem>>, vector<1x8x16xf32>
    %13 = vector.shape_cast %12 : vector<1x8x16xf32> to vector<8x16xf32>
    %14 = arith.index_cast %c0_i32_1 : i32 to index
    %c0_4 = arith.constant 0 : index
    %c0_5 = arith.constant 0 : index
    %15 = vector.load %arg4[%14, %c0_4, %c0_5] : memref<8x16x8xf32, #tpu.memory_space<vmem>>, vector<1x16x8xf32>
    %16 = vector.shape_cast %15 : vector<1x16x8xf32> to vector<16x8xf32>
    %cst_6 = arith.constant dense<0.000000e+00> : vector<8x8xf32>
    %17 = tpu.matmul %13, %13, %cst_6 {dimension_numbers = #tpu.dot_dimension_numbers<[1], [1], [0], [0], [0, 0, 1, 0], [], []>} : vector<8x16xf32>, vector<8x16xf32>, vector<8x8xf32> -> vector<8x8xf32>
    %cst_7 = arith.constant 6.250000e-02 : f32
    %18 = vector.broadcast %cst_7 : f32 to vector<8x8xf32>
    %19 = arith.mulf %17, %18 : vector<8x8xf32>
    %cst_8 = arith.constant dense<0.000000e+00> : vector<8x8xf32>
    %20 = tpu.matmul %16, %16, %cst_8 {dimension_numbers = #tpu.dot_dimension_numbers<[0], [0], [1], [1], [0, 1, 1, 1], [], []>} : vector<16x8xf32>, vector<16x8xf32>, vector<8x8xf32> -> vector<8x8xf32>
    %cst_9 = arith.constant 6.250000e-02 : f32
    %21 = vector.broadcast %cst_9 : f32 to vector<8x8xf32>
    %22 = arith.mulf %20, %21 : vector<8x8xf32>
    %23 = math.tanh %19 : vector<8x8xf32>
    %24 = vector.broadcast %0 : f32 to vector<8x8xf32>
    %25 = arith.mulf %24, %23 : vector<8x8xf32>
    %26 = arith.addf %10, %25 : vector<8x8xf32>
    %27 = math.tanh %22 : vector<8x8xf32>
    %28 = vector.broadcast %1 : f32 to vector<8x8xf32>
    %29 = arith.mulf %28, %27 : vector<8x8xf32>
    %30 = arith.addf %26, %29 : vector<8x8xf32>
    %c1_i32 = arith.constant 1 : i32
    %31 = arith.index_cast %c1_i32 : i32 to index
    %c0_10 = arith.constant 0 : index
    %c0_11 = arith.constant 0 : index
    %32 = vector.load %arg3[%31, %c0_10, %c0_11] : memref<8x8x16xf32, #tpu.memory_space<vmem>>, vector<1x8x16xf32>
    %33 = vector.shape_cast %32 : vector<1x8x16xf32> to vector<8x16xf32>
    %34 = arith.index_cast %c1_i32 : i32 to index
    %c0_12 = arith.constant 0 : index
    %c0_13 = arith.constant 0 : index
    %35 = vector.load %arg4[%34, %c0_12, %c0_13] : memref<8x16x8xf32, #tpu.memory_space<vmem>>, vector<1x16x8xf32>
    %36 = vector.shape_cast %35 : vector<1x16x8xf32> to vector<16x8xf32>
    %cst_14 = arith.constant dense<0.000000e+00> : vector<8x8xf32>
    %37 = tpu.matmul %33, %33, %cst_14 {dimension_numbers = #tpu.dot_dimension_numbers<[1], [1], [0], [0], [0, 0, 1, 0], [], []>} : vector<8x16xf32>, vector<8x16xf32>, vector<8x8xf32> -> vector<8x8xf32>
    %cst_15 = arith.constant 6.250000e-02 : f32
    %38 = vector.broadcast %cst_15 : f32 to vector<8x8xf32>
    %39 = arith.mulf %37, %38 : vector<8x8xf32>
    %cst_16 = arith.constant dense<0.000000e+00> : vector<8x8xf32>
    %40 = tpu.matmul %36, %36, %cst_16 {dimension_numbers = #tpu.dot_dimension_numbers<[0], [0], [1], [1], [0, 1, 1, 1], [], []>} : vector<16x8xf32>, vector<16x8xf32>, vector<8x8xf32> -> vector<8x8xf32>
    %cst_17 = arith.constant 6.250000e-02 : f32
    %41 = vector.broadcast %cst_17 : f32 to vector<8x8xf32>
    %42 = arith.mulf %40, %41 : vector<8x8xf32>
    %43 = math.tanh %39 : vector<8x8xf32>
    %44 = vector.broadcast %0 : f32 to vector<8x8xf32>
    %45 = arith.mulf %44, %43 : vector<8x8xf32>
    %46 = arith.addf %30, %45 : vector<8x8xf32>
    %47 = math.tanh %42 : vector<8x8xf32>
    %48 = vector.broadcast %1 : f32 to vector<8x8xf32>
    %49 = arith.mulf %48, %47 : vector<8x8xf32>
    %50 = arith.addf %46, %49 : vector<8x8xf32>
    %c2_i32 = arith.constant 2 : i32
    %51 = arith.index_cast %c2_i32 : i32 to index
    %c0_18 = arith.constant 0 : index
    %c0_19 = arith.constant 0 : index
    %52 = vector.load %arg3[%51, %c0_18, %c0_19] : memref<8x8x16xf32, #tpu.memory_space<vmem>>, vector<1x8x16xf32>
    %53 = vector.shape_cast %52 : vector<1x8x16xf32> to vector<8x16xf32>
    %54 = arith.index_cast %c2_i32 : i32 to index
    %c0_20 = arith.constant 0 : index
    %c0_21 = arith.constant 0 : index
    %55 = vector.load %arg4[%54, %c0_20, %c0_21] : memref<8x16x8xf32, #tpu.memory_space<vmem>>, vector<1x16x8xf32>
    %56 = vector.shape_cast %55 : vector<1x16x8xf32> to vector<16x8xf32>
    %cst_22 = arith.constant dense<0.000000e+00> : vector<8x8xf32>
    %57 = tpu.matmul %53, %53, %cst_22 {dimension_numbers = #tpu.dot_dimension_numbers<[1], [1], [0], [0], [0, 0, 1, 0], [], []>} : vector<8x16xf32>, vector<8x16xf32>, vector<8x8xf32> -> vector<8x8xf32>
    %cst_23 = arith.constant 6.250000e-02 : f32
    %58 = vector.broadcast %cst_23 : f32 to vector<8x8xf32>
    %59 = arith.mulf %57, %58 : vector<8x8xf32>
    %cst_24 = arith.constant dense<0.000000e+00> : vector<8x8xf32>
    %60 = tpu.matmul %56, %56, %cst_24 {dimension_numbers = #tpu.dot_dimension_numbers<[0], [0], [1], [1], [0, 1, 1, 1], [], []>} : vector<16x8xf32>, vector<16x8xf32>, vector<8x8xf32> -> vector<8x8xf32>
    %cst_25 = arith.constant 6.250000e-02 : f32
    %61 = vector.broadcast %cst_25 : f32 to vector<8x8xf32>
    %62 = arith.mulf %60, %61 : vector<8x8xf32>
    %63 = math.tanh %59 : vector<8x8xf32>
    %64 = vector.broadcast %0 : f32 to vector<8x8xf32>
    %65 = arith.mulf %64, %63 : vector<8x8xf32>
    %66 = arith.addf %50, %65 : vector<8x8xf32>
    %67 = math.tanh %62 : vector<8x8xf32>
    %68 = vector.broadcast %1 : f32 to vector<8x8xf32>
    %69 = arith.mulf %68, %67 : vector<8x8xf32>
    %70 = arith.addf %66, %69 : vector<8x8xf32>
    %c3_i32 = arith.constant 3 : i32
    %71 = arith.index_cast %c3_i32 : i32 to index
    %c0_26 = arith.constant 0 : index
    %c0_27 = arith.constant 0 : index
    %72 = vector.load %arg3[%71, %c0_26, %c0_27] : memref<8x8x16xf32, #tpu.memory_space<vmem>>, vector<1x8x16xf32>
    %73 = vector.shape_cast %72 : vector<1x8x16xf32> to vector<8x16xf32>
    %74 = arith.index_cast %c3_i32 : i32 to index
    %c0_28 = arith.constant 0 : index
    %c0_29 = arith.constant 0 : index
    %75 = vector.load %arg4[%74, %c0_28, %c0_29] : memref<8x16x8xf32, #tpu.memory_space<vmem>>, vector<1x16x8xf32>
    %76 = vector.shape_cast %75 : vector<1x16x8xf32> to vector<16x8xf32>
    %cst_30 = arith.constant dense<0.000000e+00> : vector<8x8xf32>
    %77 = tpu.matmul %73, %73, %cst_30 {dimension_numbers = #tpu.dot_dimension_numbers<[1], [1], [0], [0], [0, 0, 1, 0], [], []>} : vector<8x16xf32>, vector<8x16xf32>, vector<8x8xf32> -> vector<8x8xf32>
    %cst_31 = arith.constant 6.250000e-02 : f32
    %78 = vector.broadcast %cst_31 : f32 to vector<8x8xf32>
    %79 = arith.mulf %77, %78 : vector<8x8xf32>
    %cst_32 = arith.constant dense<0.000000e+00> : vector<8x8xf32>
    %80 = tpu.matmul %76, %76, %cst_32 {dimension_numbers = #tpu.dot_dimension_numbers<[0], [0], [1], [1], [0, 1, 1, 1], [], []>} : vector<16x8xf32>, vector<16x8xf32>, vector<8x8xf32> -> vector<8x8xf32>
    %cst_33 = arith.constant 6.250000e-02 : f32
    %81 = vector.broadcast %cst_33 : f32 to vector<8x8xf32>
    %82 = arith.mulf %80, %81 : vector<8x8xf32>
    %83 = math.tanh %79 : vector<8x8xf32>
    %84 = vector.broadcast %0 : f32 to vector<8x8xf32>
    %85 = arith.mulf %84, %83 : vector<8x8xf32>
    %86 = arith.addf %70, %85 : vector<8x8xf32>
    %87 = math.tanh %82 : vector<8x8xf32>
    %88 = vector.broadcast %1 : f32 to vector<8x8xf32>
    %89 = arith.mulf %88, %87 : vector<8x8xf32>
    %90 = arith.addf %86, %89 : vector<8x8xf32>
    %c4_i32 = arith.constant 4 : i32
    %91 = arith.index_cast %c4_i32 : i32 to index
    %c0_34 = arith.constant 0 : index
    %c0_35 = arith.constant 0 : index
    %92 = vector.load %arg3[%91, %c0_34, %c0_35] : memref<8x8x16xf32, #tpu.memory_space<vmem>>, vector<1x8x16xf32>
    %93 = vector.shape_cast %92 : vector<1x8x16xf32> to vector<8x16xf32>
    %94 = arith.index_cast %c4_i32 : i32 to index
    %c0_36 = arith.constant 0 : index
    %c0_37 = arith.constant 0 : index
    %95 = vector.load %arg4[%94, %c0_36, %c0_37] : memref<8x16x8xf32, #tpu.memory_space<vmem>>, vector<1x16x8xf32>
    %96 = vector.shape_cast %95 : vector<1x16x8xf32> to vector<16x8xf32>
    %cst_38 = arith.constant dense<0.000000e+00> : vector<8x8xf32>
    %97 = tpu.matmul %93, %93, %cst_38 {dimension_numbers = #tpu.dot_dimension_numbers<[1], [1], [0], [0], [0, 0, 1, 0], [], []>} : vector<8x16xf32>, vector<8x16xf32>, vector<8x8xf32> -> vector<8x8xf32>
    %cst_39 = arith.constant 6.250000e-02 : f32
    %98 = vector.broadcast %cst_39 : f32 to vector<8x8xf32>
    %99 = arith.mulf %97, %98 : vector<8x8xf32>
    %cst_40 = arith.constant dense<0.000000e+00> : vector<8x8xf32>
    %100 = tpu.matmul %96, %96, %cst_40 {dimension_numbers = #tpu.dot_dimension_numbers<[0], [0], [1], [1], [0, 1, 1, 1], [], []>} : vector<16x8xf32>, vector<16x8xf32>, vector<8x8xf32> -> vector<8x8xf32>
    %cst_41 = arith.constant 6.250000e-02 : f32
    %101 = vector.broadcast %cst_41 : f32 to vector<8x8xf32>
    %102 = arith.mulf %100, %101 : vector<8x8xf32>
    %103 = math.tanh %99 : vector<8x8xf32>
    %104 = vector.broadcast %0 : f32 to vector<8x8xf32>
    %105 = arith.mulf %104, %103 : vector<8x8xf32>
    %106 = arith.addf %90, %105 : vector<8x8xf32>
    %107 = math.tanh %102 : vector<8x8xf32>
    %108 = vector.broadcast %1 : f32 to vector<8x8xf32>
    %109 = arith.mulf %108, %107 : vector<8x8xf32>
    %110 = arith.addf %106, %109 : vector<8x8xf32>
    %c5_i32 = arith.constant 5 : i32
    %111 = arith.index_cast %c5_i32 : i32 to index
    %c0_42 = arith.constant 0 : index
    %c0_43 = arith.constant 0 : index
    %112 = vector.load %arg3[%111, %c0_42, %c0_43] : memref<8x8x16xf32, #tpu.memory_space<vmem>>, vector<1x8x16xf32>
    %113 = vector.shape_cast %112 : vector<1x8x16xf32> to vector<8x16xf32>
    %114 = arith.index_cast %c5_i32 : i32 to index
    %c0_44 = arith.constant 0 : index
    %c0_45 = arith.constant 0 : index
    %115 = vector.load %arg4[%114, %c0_44, %c0_45] : memref<8x16x8xf32, #tpu.memory_space<vmem>>, vector<1x16x8xf32>
    %116 = vector.shape_cast %115 : vector<1x16x8xf32> to vector<16x8xf32>
    %cst_46 = arith.constant dense<0.000000e+00> : vector<8x8xf32>
    %117 = tpu.matmul %113, %113, %cst_46 {dimension_numbers = #tpu.dot_dimension_numbers<[1], [1], [0], [0], [0, 0, 1, 0], [], []>} : vector<8x16xf32>, vector<8x16xf32>, vector<8x8xf32> -> vector<8x8xf32>
    %cst_47 = arith.constant 6.250000e-02 : f32
    %118 = vector.broadcast %cst_47 : f32 to vector<8x8xf32>
    %119 = arith.mulf %117, %118 : vector<8x8xf32>
    %cst_48 = arith.constant dense<0.000000e+00> : vector<8x8xf32>
    %120 = tpu.matmul %116, %116, %cst_48 {dimension_numbers = #tpu.dot_dimension_numbers<[0], [0], [1], [1], [0, 1, 1, 1], [], []>} : vector<16x8xf32>, vector<16x8xf32>, vector<8x8xf32> -> vector<8x8xf32>
    %cst_49 = arith.constant 6.250000e-02 : f32
    %121 = vector.broadcast %cst_49 : f32 to vector<8x8xf32>
    %122 = arith.mulf %120, %121 : vector<8x8xf32>
    %123 = math.tanh %119 : vector<8x8xf32>
    %124 = vector.broadcast %0 : f32 to vector<8x8xf32>
    %125 = arith.mulf %124, %123 : vector<8x8xf32>
    %126 = arith.addf %110, %125 : vector<8x8xf32>
    %127 = math.tanh %122 : vector<8x8xf32>
    %128 = vector.broadcast %1 : f32 to vector<8x8xf32>
    %129 = arith.mulf %128, %127 : vector<8x8xf32>
    %130 = arith.addf %126, %129 : vector<8x8xf32>
    %c6_i32 = arith.constant 6 : i32
    %131 = arith.index_cast %c6_i32 : i32 to index
    %c0_50 = arith.constant 0 : index
    %c0_51 = arith.constant 0 : index
    %132 = vector.load %arg3[%131, %c0_50, %c0_51] : memref<8x8x16xf32, #tpu.memory_space<vmem>>, vector<1x8x16xf32>
    %133 = vector.shape_cast %132 : vector<1x8x16xf32> to vector<8x16xf32>
    %134 = arith.index_cast %c6_i32 : i32 to index
    %c0_52 = arith.constant 0 : index
    %c0_53 = arith.constant 0 : index
    %135 = vector.load %arg4[%134, %c0_52, %c0_53] : memref<8x16x8xf32, #tpu.memory_space<vmem>>, vector<1x16x8xf32>
    %136 = vector.shape_cast %135 : vector<1x16x8xf32> to vector<16x8xf32>
    %cst_54 = arith.constant dense<0.000000e+00> : vector<8x8xf32>
    %137 = tpu.matmul %133, %133, %cst_54 {dimension_numbers = #tpu.dot_dimension_numbers<[1], [1], [0], [0], [0, 0, 1, 0], [], []>} : vector<8x16xf32>, vector<8x16xf32>, vector<8x8xf32> -> vector<8x8xf32>
    %cst_55 = arith.constant 6.250000e-02 : f32
    %138 = vector.broadcast %cst_55 : f32 to vector<8x8xf32>
    %139 = arith.mulf %137, %138 : vector<8x8xf32>
    %cst_56 = arith.constant dense<0.000000e+00> : vector<8x8xf32>
    %140 = tpu.matmul %136, %136, %cst_56 {dimension_numbers = #tpu.dot_dimension_numbers<[0], [0], [1], [1], [0, 1, 1, 1], [], []>} : vector<16x8xf32>, vector<16x8xf32>, vector<8x8xf32> -> vector<8x8xf32>
    %cst_57 = arith.constant 6.250000e-02 : f32
    %141 = vector.broadcast %cst_57 : f32 to vector<8x8xf32>
    %142 = arith.mulf %140, %141 : vector<8x8xf32>
    %143 = math.tanh %139 : vector<8x8xf32>
    %144 = vector.broadcast %0 : f32 to vector<8x8xf32>
    %145 = arith.mulf %144, %143 : vector<8x8xf32>
    %146 = arith.addf %130, %145 : vector<8x8xf32>
    %147 = math.tanh %142 : vector<8x8xf32>
    %148 = vector.broadcast %1 : f32 to vector<8x8xf32>
    %149 = arith.mulf %148, %147 : vector<8x8xf32>
    %150 = arith.addf %146, %149 : vector<8x8xf32>
    %c7_i32 = arith.constant 7 : i32
    %151 = arith.index_cast %c7_i32 : i32 to index
    %c0_58 = arith.constant 0 : index
    %c0_59 = arith.constant 0 : index
    %152 = vector.load %arg3[%151, %c0_58, %c0_59] : memref<8x8x16xf32, #tpu.memory_space<vmem>>, vector<1x8x16xf32>
    %153 = vector.shape_cast %152 : vector<1x8x16xf32> to vector<8x16xf32>
    %154 = arith.index_cast %c7_i32 : i32 to index
    %c0_60 = arith.constant 0 : index
    %c0_61 = arith.constant 0 : index
    %155 = vector.load %arg4[%154, %c0_60, %c0_61] : memref<8x16x8xf32, #tpu.memory_space<vmem>>, vector<1x16x8xf32>
    %156 = vector.shape_cast %155 : vector<1x16x8xf32> to vector<16x8xf32>
    %cst_62 = arith.constant dense<0.000000e+00> : vector<8x8xf32>
    %157 = tpu.matmul %153, %153, %cst_62 {dimension_numbers = #tpu.dot_dimension_numbers<[1], [1], [0], [0], [0, 0, 1, 0], [], []>} : vector<8x16xf32>, vector<8x16xf32>, vector<8x8xf32> -> vector<8x8xf32>
    %cst_63 = arith.constant 6.250000e-02 : f32
    %158 = vector.broadcast %cst_63 : f32 to vector<8x8xf32>
    %159 = arith.mulf %157, %158 : vector<8x8xf32>
    %cst_64 = arith.constant dense<0.000000e+00> : vector<8x8xf32>
    %160 = tpu.matmul %156, %156, %cst_64 {dimension_numbers = #tpu.dot_dimension_numbers<[0], [0], [1], [1], [0, 1, 1, 1], [], []>} : vector<16x8xf32>, vector<16x8xf32>, vector<8x8xf32> -> vector<8x8xf32>
    %cst_65 = arith.constant 6.250000e-02 : f32
    %161 = vector.broadcast %cst_65 : f32 to vector<8x8xf32>
    %162 = arith.mulf %160, %161 : vector<8x8xf32>
    %163 = math.tanh %159 : vector<8x8xf32>
    %164 = vector.broadcast %0 : f32 to vector<8x8xf32>
    %165 = arith.mulf %164, %163 : vector<8x8xf32>
    %166 = arith.addf %150, %165 : vector<8x8xf32>
    %167 = math.tanh %162 : vector<8x8xf32>
    %168 = vector.broadcast %1 : f32 to vector<8x8xf32>
    %169 = arith.mulf %168, %167 : vector<8x8xf32>
    %170 = arith.addf %166, %169 : vector<8x8xf32>
    %c8_i32 = arith.constant 8 : i32
    %c0_66 = arith.constant 0 : index
    %c0_67 = arith.constant 0 : index
    %171 = vector.load %arg6[%c0_66, %c0_67] : memref<8x8xf32, #tpu.memory_space<vmem>>, vector<8x8xf32>
    %172 = arith.addf %171, %170 : vector<8x8xf32>
    %c0_68 = arith.constant 0 : index
    %c0_69 = arith.constant 0 : index
    %173 = vector.load %arg6[%c0_68, %c0_69] : memref<8x8xf32, #tpu.memory_space<vmem>>, vector<8x8xf32>
    tpu.vector_store %arg6[%c0_68, %c0_69], %172 {strides = array<i32>} : memref<8x8xf32, #tpu.memory_space<vmem>>, vector<8x8xf32>,
    %c0_i32_70 = arith.constant 0 : i32
    %174 = arith.cmpi eq, %arg0, %c0_i32_70 : i32
    %175 = arith.extui %174 : i1 to i32
    %c0_i32_71 = arith.constant 0 : i32
    %176 = arith.cmpi ne, %175, %c0_i32_71 : i32
    scf.if %176 {
      %c0_72 = arith.constant 0 : index
      %c0_73 = arith.constant 0 : index
      %177 = vector.load %arg6[%c0_72, %c0_73] : memref<8x8xf32, #tpu.memory_space<vmem>>, vector<8x8xf32>
      %c0_74 = arith.constant 0 : index
      %c0_75 = arith.constant 0 : index
      %178 = vector.load %arg2[%c0_74, %c0_75] : memref<8x8xf32, #tpu.memory_space<vmem>>, vector<8x8xf32>
      %179 = arith.addf %177, %178 : vector<8x8xf32>
      %cst_76 = arith.constant 0.000000e+00 : f32
      %180 = vector.broadcast %cst_76 : f32 to vector<1x128xf32>
      %c0_77 = arith.constant 0 : index
      %c0_78 = arith.constant 0 : index
      %181 = vector.load %arg7[%c0_77, %c0_78] : memref<1x128xf32, #tpu.memory_space<vmem>>, vector<1x128xf32>
      tpu.vector_store %arg7[%c0_77, %c0_78], %180 {strides = array<i32>} : memref<1x128xf32, #tpu.memory_space<vmem>>, vector<1x128xf32>,
      %182 = vector.extract_strided_slice %179 {offsets = [0, 0], sizes = [1, 8], strides = [1, 1]} : vector<8x8xf32> to vector<1x8xf32>
      %c0_79 = arith.constant 0 : index
      %c0_80 = arith.constant 0 : index
      %183 = vector.load %arg7[%c0_79, %c0_80] : memref<1x128xf32, #tpu.memory_space<vmem>>, vector<1x8xf32>
      tpu.vector_store %arg7[%c0_79, %c0_80], %182 {strides = array<i32>} : memref<1x128xf32, #tpu.memory_space<vmem>>, vector<1x8xf32>,
      %184 = vector.extract_strided_slice %179 {offsets = [1, 0], sizes = [1, 8], strides = [1, 1]} : vector<8x8xf32> to vector<1x8xf32>
      %c0_81 = arith.constant 0 : index
      %c8 = arith.constant 8 : index
      %185 = vector.load %arg7[%c0_81, %c8] : memref<1x128xf32, #tpu.memory_space<vmem>>, vector<1x8xf32>
      tpu.vector_store %arg7[%c0_81, %c8], %184 {strides = array<i32>} : memref<1x128xf32, #tpu.memory_space<vmem>>, vector<1x8xf32>,
      %186 = vector.extract_strided_slice %179 {offsets = [2, 0], sizes = [1, 8], strides = [1, 1]} : vector<8x8xf32> to vector<1x8xf32>
      %c0_82 = arith.constant 0 : index
      %c16 = arith.constant 16 : index
      %187 = vector.load %arg7[%c0_82, %c16] : memref<1x128xf32, #tpu.memory_space<vmem>>, vector<1x8xf32>
      tpu.vector_store %arg7[%c0_82, %c16], %186 {strides = array<i32>} : memref<1x128xf32, #tpu.memory_space<vmem>>, vector<1x8xf32>,
      %188 = vector.extract_strided_slice %179 {offsets = [3, 0], sizes = [1, 8], strides = [1, 1]} : vector<8x8xf32> to vector<1x8xf32>
      %c0_83 = arith.constant 0 : index
      %c24 = arith.constant 24 : index
      %189 = vector.load %arg7[%c0_83, %c24] : memref<1x128xf32, #tpu.memory_space<vmem>>, vector<1x8xf32>
      tpu.vector_store %arg7[%c0_83, %c24], %188 {strides = array<i32>} : memref<1x128xf32, #tpu.memory_space<vmem>>, vector<1x8xf32>,
      %190 = vector.extract_strided_slice %179 {offsets = [4, 0], sizes = [1, 8], strides = [1, 1]} : vector<8x8xf32> to vector<1x8xf32>
      %c0_84 = arith.constant 0 : index
      %c32 = arith.constant 32 : index
      %191 = vector.load %arg7[%c0_84, %c32] : memref<1x128xf32, #tpu.memory_space<vmem>>, vector<1x8xf32>
      tpu.vector_store %arg7[%c0_84, %c32], %190 {strides = array<i32>} : memref<1x128xf32, #tpu.memory_space<vmem>>, vector<1x8xf32>,
      %192 = vector.extract_strided_slice %179 {offsets = [5, 0], sizes = [1, 8], strides = [1, 1]} : vector<8x8xf32> to vector<1x8xf32>
      %c0_85 = arith.constant 0 : index
      %c40 = arith.constant 40 : index
      %193 = vector.load %arg7[%c0_85, %c40] : memref<1x128xf32, #tpu.memory_space<vmem>>, vector<1x8xf32>
      tpu.vector_store %arg7[%c0_85, %c40], %192 {strides = array<i32>} : memref<1x128xf32, #tpu.memory_space<vmem>>, vector<1x8xf32>,
      %194 = vector.extract_strided_slice %179 {offsets = [6, 0], sizes = [1, 8], strides = [1, 1]} : vector<8x8xf32> to vector<1x8xf32>
      %c0_86 = arith.constant 0 : index
      %c48 = arith.constant 48 : index
      %195 = vector.load %arg7[%c0_86, %c48] : memref<1x128xf32, #tpu.memory_space<vmem>>, vector<1x8xf32>
      tpu.vector_store %arg7[%c0_86, %c48], %194 {strides = array<i32>} : memref<1x128xf32, #tpu.memory_space<vmem>>, vector<1x8xf32>,
      %196 = vector.extract_strided_slice %179 {offsets = [7, 0], sizes = [1, 8], strides = [1, 1]} : vector<8x8xf32> to vector<1x8xf32>
      %c0_87 = arith.constant 0 : index
      %c56 = arith.constant 56 : index
      %197 = vector.load %arg7[%c0_87, %c56] : memref<1x128xf32, #tpu.memory_space<vmem>>, vector<1x8xf32>
      tpu.vector_store %arg7[%c0_87, %c56], %196 {strides = array<i32>} : memref<1x128xf32, #tpu.memory_space<vmem>>, vector<1x8xf32>,
      %c0_88 = arith.constant 0 : index
      %c0_89 = arith.constant 0 : index
      %198 = vector.load %arg7[%c0_88, %c0_89] : memref<1x128xf32, #tpu.memory_space<vmem>>, vector<1x128xf32>
      %199 = tpu.iota {dimensions = array<i32: 1>} : vector<1x128xi32>
      %c64_i32 = arith.constant 64 : i32
      %200 = vector.broadcast %c64_i32 : i32 to vector<1x128xi32>
      %201 = arith.cmpi slt, %199, %200 : vector<1x128xi32>
      %202 = vector.broadcast %5 : f32 to vector<1x128xf32>
      %203 = arith.mulf %202, %198 : vector<1x128xf32>
      %204 = vector.broadcast %6 : f32 to vector<1x128xf32>
      %205 = arith.addf %203, %204 : vector<1x128xf32>
      %206 = arith.negf %205 : vector<1x128xf32>
      %207 = math.exp %206 : vector<1x128xf32>
      %cst_90 = arith.constant 1.000000e+00 : f32
      %208 = vector.broadcast %cst_90 : f32 to vector<1x128xf32>
      %209 = arith.addf %208, %207 : vector<1x128xf32>
      %210 = arith.divf %208, %209 : vector<1x128xf32>
      %cst_91 = arith.constant 0.000000e+00 : f32
      %211 = vector.broadcast %cst_91 : f32 to vector<1x128xf32>
      %212 = arith.select %201, %210, %211 : vector<1x128xi1>, vector<1x128xf32>
      %c0_92 = arith.constant 0 : index
      %c0_93 = arith.constant 0 : index
      %213 = vector.load %arg8[%c0_92, %c0_93] : memref<1x128xf32, #tpu.memory_space<vmem>>, vector<1x128xf32>
      tpu.vector_store %arg8[%c0_92, %c0_93], %212 {strides = array<i32>} : memref<1x128xf32, #tpu.memory_space<vmem>>, vector<1x128xf32>,
      %214 = tpu.iota {dimensions = array<i32: 0>} : vector<128x128xi32>
      %215 = tpu.iota {dimensions = array<i32: 1>} : vector<128x128xi32>
      %216 = arith.cmpi eq, %214, %215 : vector<128x128xi32>
      %217 = arith.extui %216 : vector<128x128xi1> to vector<128x128xi32>
      %218 = arith.sitofp %217 : vector<128x128xi32> to vector<128x128xf32>
      %cst_94 = arith.constant dense<0.000000e+00> : vector<128x1xf32>
      %219 = tpu.matmul %218, %198, %cst_94 {dimension_numbers = #tpu.dot_dimension_numbers<[1], [1], [0], [0], [0, 0, 1, 0], [], []>, precision = #tpu.contract_precision<fp32>} : vector<128x128xf32>, vector<1x128xf32>, vector<128x1xf32> -> vector<128x1xf32>
      %c0_95 = arith.constant 0 : index
      %c0_96 = arith.constant 0 : index
      %220 = vector.load %arg9[%c0_95, %c0_96] : memref<128x1xf32, #tpu.memory_space<vmem>>, vector<128x1xf32>
      tpu.vector_store %arg9[%c0_95, %c0_96], %219 {strides = array<i32>} : memref<128x1xf32, #tpu.memory_space<vmem>>, vector<128x1xf32>,
      %cst_97 = arith.constant 1.562500e-02 : f32
      %221 = arith.mulf %3, %cst_97 : f32
      %cst_98 = arith.constant 1.562500e-02 : f32
      %222 = arith.mulf %5, %cst_98 : f32
      %cst_99 = arith.constant 0.000000e+00 : f32
      %223 = vector.broadcast %cst_99 : f32 to vector<1x128xf32>
      %c0_i32_100 = arith.constant 0 : i32
      %c128_i32 = arith.constant 128 : i32
      %224 = arith.muli %c0_i32_100, %c128_i32 : i32
      %225 = tpu.assume_multiple %224, 128 : i32
      %226 = arith.index_cast %225 : i32 to index
      %c0_101 = arith.constant 0 : index
      %227 = vector.load %arg9[%226, %c0_101] : memref<128x1xf32, #tpu.memory_space<vmem>>, vector<128x1xf32>
      %228 = vector.broadcast %3 : f32 to vector<128x1xf32>
      %229 = arith.mulf %228, %227 : vector<128x1xf32>
      %230 = vector.broadcast %4 : f32 to vector<128x1xf32>
      %231 = arith.addf %229, %230 : vector<128x1xf32>
      %232 = arith.negf %231 : vector<128x1xf32>
      %233 = math.exp %232 : vector<128x1xf32>
      %cst_102 = arith.constant 1.000000e+00 : f32
      %234 = vector.broadcast %cst_102 : f32 to vector<128x1xf32>
      %235 = arith.addf %234, %233 : vector<128x1xf32>
      %236 = arith.divf %234, %235 : vector<128x1xf32>
      %237 = vector.broadcast %5 : f32 to vector<128x1xf32>
      %238 = arith.mulf %237, %227 : vector<128x1xf32>
      %239 = vector.broadcast %6 : f32 to vector<128x1xf32>
      %240 = arith.addf %238, %239 : vector<128x1xf32>
      %241 = arith.negf %240 : vector<128x1xf32>
      %242 = math.exp %241 : vector<128x1xf32>
      %cst_103 = arith.constant 1.000000e+00 : f32
      %243 = vector.broadcast %cst_103 : f32 to vector<128x1xf32>
      %244 = arith.addf %243, %242 : vector<128x1xf32>
      %245 = arith.divf %243, %244 : vector<128x1xf32>
      %246 = tpu.iota {dimensions = array<i32: 0>} : vector<128x1xi32>
      %247 = vector.broadcast %225 : i32 to vector<128x1xi32>
      %248 = arith.addi %247, %246 : vector<128x1xi32>
      %c64_i32_104 = arith.constant 64 : i32
      %249 = vector.broadcast %c64_i32_104 : i32 to vector<128x1xi32>
      %250 = arith.cmpi slt, %248, %249 : vector<128x1xi32>
      %cst_105 = arith.constant 0.000000e+00 : f32
      %251 = vector.broadcast %cst_105 : f32 to vector<128x1xf32>
      %252 = arith.select %250, %245, %251 : vector<128x1xi1>, vector<128x1xf32>
      %c0_106 = arith.constant 0 : index
      %c0_107 = arith.constant 0 : index
      %253 = vector.load %arg8[%c0_106, %c0_107] : memref<1x128xf32, #tpu.memory_space<vmem>>, vector<1x128xf32>
      %254 = vector.broadcast %236 : vector<128x1xf32> to vector<128x128xf32>
      %255 = vector.broadcast %253 : vector<1x128xf32> to vector<128x128xf32>
      %256 = arith.mulf %254, %255 : vector<128x128xf32>
      %257 = vector.broadcast %221 : f32 to vector<128x128xf32>
      %258 = arith.mulf %257, %256 : vector<128x128xf32>
      %259 = vector.broadcast %4 : f32 to vector<128x128xf32>
      %260 = arith.addf %258, %259 : vector<128x128xf32>
      %261 = arith.negf %260 : vector<128x128xf32>
      %262 = math.exp %261 : vector<128x128xf32>
      %cst_108 = arith.constant 1.000000e+00 : f32
      %263 = vector.broadcast %cst_108 : f32 to vector<128x128xf32>
      %264 = arith.addf %263, %262 : vector<128x128xf32>
      %265 = arith.divf %263, %264 : vector<128x128xf32>
      %cst_109 = arith.constant dense<0.000000e+00> : vector<1x128xf32>
      %266 = tpu.matmul %252, %265, %cst_109 {dimension_numbers = #tpu.dot_dimension_numbers<[0], [0], [1], [1], [0, 1, 1, 1], [], []>} : vector<128x1xf32>, vector<128x128xf32>, vector<1x128xf32> -> vector<1x128xf32>
      %267 = arith.addf %223, %266 : vector<1x128xf32>
      %c1_i32_110 = arith.constant 1 : i32
      %cst_111 = arith.constant 1.562500e-02 : f32
      %268 = vector.broadcast %cst_111 : f32 to vector<1x128xf32>
      %269 = arith.mulf %267, %268 : vector<1x128xf32>
      %270 = math.tanh %269 : vector<1x128xf32>
      %cst_112 = arith.constant 0.000000e+00 : f32
      %271 = vector.broadcast %cst_112 : f32 to vector<1x128xf32>
      %272 = arith.select %201, %270, %271 : vector<1x128xi1>, vector<1x128xf32>
      %cst_113 = arith.constant dense<0.000000e+00> : vector<128x1xf32>
      %273 = tpu.matmul %218, %272, %cst_113 {dimension_numbers = #tpu.dot_dimension_numbers<[1], [1], [0], [0], [0, 0, 1, 0], [], []>, precision = #tpu.contract_precision<fp32>} : vector<128x128xf32>, vector<1x128xf32>, vector<128x1xf32> -> vector<128x1xf32>
      %c0_114 = arith.constant 0 : index
      %c0_115 = arith.constant 0 : index
      %274 = vector.load %arg10[%c0_114, %c0_115] : memref<128x1xf32, #tpu.memory_space<vmem>>, vector<128x1xf32>
      tpu.vector_store %arg10[%c0_114, %c0_115], %273 {strides = array<i32>} : memref<128x1xf32, #tpu.memory_space<vmem>>, vector<128x1xf32>,
      %cst_116 = arith.constant 0.000000e+00 : f32
      %275 = vector.broadcast %cst_116 : f32 to vector<1x128xf32>
      %c0_i32_117 = arith.constant 0 : i32
      %c128_i32_118 = arith.constant 128 : i32
      %276 = arith.muli %c0_i32_117, %c128_i32_118 : i32
      %277 = tpu.assume_multiple %276, 128 : i32
      %278 = arith.index_cast %277 : i32 to index
      %c0_119 = arith.constant 0 : index
      %279 = vector.load %arg9[%278, %c0_119] : memref<128x1xf32, #tpu.memory_space<vmem>>, vector<128x1xf32>
      %280 = vector.broadcast %3 : f32 to vector<128x1xf32>
      %281 = arith.mulf %280, %279 : vector<128x1xf32>
      %282 = vector.broadcast %4 : f32 to vector<128x1xf32>
      %283 = arith.addf %281, %282 : vector<128x1xf32>
      %284 = arith.negf %283 : vector<128x1xf32>
      %285 = math.exp %284 : vector<128x1xf32>
      %cst_120 = arith.constant 1.000000e+00 : f32
      %286 = vector.broadcast %cst_120 : f32 to vector<128x1xf32>
      %287 = arith.addf %286, %285 : vector<128x1xf32>
      %288 = arith.divf %286, %287 : vector<128x1xf32>
      %289 = arith.index_cast %277 : i32 to index
      %c0_121 = arith.constant 0 : index
      %290 = vector.load %arg10[%289, %c0_121] : memref<128x1xf32, #tpu.memory_space<vmem>>, vector<128x1xf32>
      %c0_122 = arith.constant 0 : index
      %c0_123 = arith.constant 0 : index
      %291 = vector.load %arg8[%c0_122, %c0_123] : memref<1x128xf32, #tpu.memory_space<vmem>>, vector<1x128xf32>
      %292 = vector.broadcast %288 : vector<128x1xf32> to vector<128x128xf32>
      %293 = vector.broadcast %291 : vector<1x128xf32> to vector<128x128xf32>
      %294 = arith.mulf %292, %293 : vector<128x128xf32>
      %295 = vector.broadcast %222 : f32 to vector<128x128xf32>
      %296 = arith.mulf %295, %294 : vector<128x128xf32>
      %297 = vector.broadcast %6 : f32 to vector<128x128xf32>
      %298 = arith.addf %296, %297 : vector<128x128xf32>
      %299 = arith.negf %298 : vector<128x128xf32>
      %300 = math.exp %299 : vector<128x128xf32>
      %cst_124 = arith.constant 1.000000e+00 : f32
      %301 = vector.broadcast %cst_124 : f32 to vector<128x128xf32>
      %302 = arith.addf %301, %300 : vector<128x128xf32>
      %303 = arith.divf %301, %302 : vector<128x128xf32>
      %cst_125 = arith.constant dense<0.000000e+00> : vector<1x128xf32>
      %304 = tpu.matmul %290, %303, %cst_125 {dimension_numbers = #tpu.dot_dimension_numbers<[0], [0], [1], [1], [0, 1, 1, 1], [], []>} : vector<128x1xf32>, vector<128x128xf32>, vector<1x128xf32> -> vector<1x128xf32>
      %305 = arith.addf %275, %304 : vector<1x128xf32>
      %c1_i32_126 = arith.constant 1 : i32
      %cst_127 = arith.constant 1.562500e-02 : f32
      %306 = vector.broadcast %cst_127 : f32 to vector<1x128xf32>
      %307 = arith.mulf %305, %306 : vector<1x128xf32>
      %308 = math.tanh %307 : vector<1x128xf32>
      %309 = vector.broadcast %3 : f32 to vector<1x128xf32>
      %310 = arith.mulf %309, %198 : vector<1x128xf32>
      %311 = vector.broadcast %4 : f32 to vector<1x128xf32>
      %312 = arith.addf %310, %311 : vector<1x128xf32>
      %313 = arith.negf %312 : vector<1x128xf32>
      %314 = math.exp %313 : vector<1x128xf32>
      %cst_128 = arith.constant 1.000000e+00 : f32
      %315 = vector.broadcast %cst_128 : f32 to vector<1x128xf32>
      %316 = arith.addf %315, %314 : vector<1x128xf32>
      %317 = arith.divf %315, %316 : vector<1x128xf32>
      %318 = arith.mulf %198, %317 : vector<1x128xf32>
      %319 = vector.shape_cast %318 : vector<1x128xf32> to vector<1x1x128xf32>
      %cst_129 = arith.constant dense<0.000000e+00> : vector<1xf32>
      %320 = vector.multi_reduction <add>, %319, %cst_129 [1, 2] : vector<1x1x128xf32> to vector<1xf32>
      %321 = vector.shape_cast %320 : vector<1xf32> to vector<1x1x1xf32>
      %322 = vector.extract %321[0, 0, 0] : f32 from vector<1x1x1xf32>
      %323 = vector.broadcast %322 : f32 to vector<1x1xf32>
      %cst_130 = arith.constant 1.562500e-02 : f32
      %324 = vector.broadcast %cst_130 : f32 to vector<1x1xf32>
      %325 = arith.mulf %323, %324 : vector<1x1xf32>
      %326 = math.tanh %325 : vector<1x1xf32>
      %cst_131 = arith.constant 1.562500e-02 : f32
      %327 = vector.broadcast %cst_131 : f32 to vector<1x1xf32>
      %328 = arith.mulf %326, %327 : vector<1x1xf32>
      %329 = vector.broadcast %328 : vector<1x1xf32> to vector<1x128xf32>
      %330 = arith.mulf %308, %329 : vector<1x128xf32>
      %331 = math.tanh %330 : vector<1x128xf32>
      %332 = vector.broadcast %2 : f32 to vector<1x128xf32>
      %333 = arith.mulf %332, %331 : vector<1x128xf32>
      %334 = arith.addf %333, %198 : vector<1x128xf32>
      %c0_132 = arith.constant 0 : index
      %c0_133 = arith.constant 0 : index
      %335 = vector.load %arg5[%c0_132, %c0_133] : memref<1x128xf32, #tpu.memory_space<vmem>>, vector<1x128xf32>
      tpu.vector_store %arg5[%c0_132, %c0_133], %334 {strides = array<i32>} : memref<1x128xf32, #tpu.memory_space<vmem>>, vector<1x128xf32>,
    } else {
    }
    return
  }
  func.func @transform_0(%arg0: i32, %arg1: memref<7xf32, #tpu.memory_space<smem>>) -> (i32, i32) {
    %c0_i32 = arith.constant 0 : i32
    %c0_i32_0 = arith.constant 0 : i32
    %c0_i32_1 = arith.constant 0 : i32
    return %c0_i32, %c0_i32_0 : i32, i32
  }
  func.func @transform_1(%arg0: i32, %arg1: memref<7xf32, #tpu.memory_space<smem>>) -> (i32, i32, i32) {
    %c0_i32 = arith.constant 0 : i32
    %c0_i32_0 = arith.constant 0 : i32
    %c0_i32_1 = arith.constant 0 : i32
    return %arg0, %c0_i32, %c0_i32_0 : i32, i32, i32
  }
  func.func @transform_2(%arg0: i32, %arg1: memref<7xf32, #tpu.memory_space<smem>>) -> (i32, i32, i32) {
    %c0_i32 = arith.constant 0 : i32
    %c0_i32_0 = arith.constant 0 : i32
    %c0_i32_1 = arith.constant 0 : i32
    return %arg0, %c0_i32, %c0_i32_0 : i32, i32, i32
  }
  func.func @transform_3(%arg0: i32, %arg1: memref<7xf32, #tpu.memory_space<smem>>) -> (i32, i32) {
    %c0_i32 = arith.constant 0 : i32
    %c0_i32_0 = arith.constant 0 : i32
    %c0_i32_1 = arith.constant 0 : i32
    return %c0_i32, %c0_i32_0 : i32, i32
  }
}

</mosaic_0001>

<bundles_post_ra>
// kernel: tpu_custom_call.1
= control target key start
LH: loop header
LB: loop body
LE: loop exit
PB: predicated region body
PF: predicated region fallthrough
CT: control target
= control target key end

     0   :  { %s4657_s0 = inlined_call_operand.vmem [shape: f32[7], index: 0, kind: input, shape index: {}]   ;;  %s4658_s1 = inlined_call_operand.vmem [shape: f32[8,8], index: 1, kind: input, shape index: {}]   ;;  %s4659_s2 = inlined_call_operand.vmem [shape: f32[8,8,16], index: 2, kind: input, shape index: {}]   ;;  %s4660_s3 = inlined_call_operand.vmem [shape: f32[8,16,8], index: 3, kind: input, shape index: {}]   ;;  %s4661_s4 = inlined_call_operand.hbm [shape: f32[1,128], index: 4, kind: output, shape index: {}]  }
   0x1   :  { %s9_s17 = sshll.u32 %s4657_s0, 4  ;;  %s10_s17 = int_to_ptr.vmem [resolvable:$true] %s9_s17 }
   0x2   :  { %s3853_s18 = scalar_lea.vmem %s10_s17, 16  ;;  %p3858_p1 = scmp.lt.s32.totalorder %s10_s17, %s10_s17 }
   0x3   :  { %p3854_p0 = scmp.ne.s32.totalorder %s10_s17, %s3853_s18  ;;  %p3859_p2 = scmp.lt.s32.totalorder %s3853_s18, %s3853_s18 }
   0x5   :  { %p3860_p3 = por %p3859_p2, %p3858_p1 }
   0x7   :  { %p3861_p4 = pnand %p3860_p3, %p3854_p0 }
   0x9   :  { %3864 = shalt.err (!%p3861_p4)  }
   0xa   :  { %s3891_s19 = smov [#allocation8]  }
   0xb   :  { %12 = dma.vmem_to_smem %s10_s17, 16, %s3891_s19, [#allocation7] }
   0xc   :  { %3887 = dma.done.wait [#allocation7], 16 }
   0xd   :  { %3888 = vsyncadd [#allocation7], 4294967280 }
   0xe   :  { %14 = sfence }
   0xf   :  { %v36_v0 = vld [vmem:[%s4660_s3] sm:$0xff]  ;;  %v3938_v1 = vld [vmem:[%s4660_s3 + $0x10] sm:$0xff]  ;;  %v37_v2 = vld [vmem:[%s4660_s3 + $0x8] sm:$0xff]  ;;  %v3892_v6 = vmov 0.0   ;;  %v3893_v13 = vmov 0.0|0.0   ;;  %vm38_vm0 = vcmask 130048  }
  0x10   :  { %113 = vxpose.xlu0.b32.start [1/2] (short) (narrow) %v36_v0, 8  ;;  %306 = vxpose.xlu1.b32.start [1/2] (short) (narrow) %v3938_v1, 8  ;;  %v3947_v3 = vld [vmem:[%s4660_s3 + $0x18] sm:$0xff]  ;;  %v3952_v4 = vld [vmem:[%s4660_s3 + $0x20] sm:$0xff]  ;;  %v3957_v5 = vld [vmem:[%s4660_s3 + $0x28] sm:$0xff]  ;;  %v3427_v7 = vpack.c.bf16 %v37_v2, %v36_v0  ;;  %vm3894_vm1 = vmmov 0  }
  0x11   :  { %1574 = vst [vmem:[#allocation3] sm:$0x1] %v3892_v6  ;;  %v3430_v8 = vpack.c.bf16 %v3947_v3, %v3938_v1  ;;  %v3433_v9 = vpack.c.bf16 %v3957_v5, %v3952_v4  ;;  %v3967_v10 = vld [vmem:[%s4660_s3 + $0x30] sm:$0xff]  ;;  %v3972_v11 = vld [vmem:[%s4660_s3 + $0x38] sm:$0xff]  ;;  %v3977_v12 = vld [vmem:[%s4660_s3 + $0x40] sm:$0xff]  ;;  %3260 = vmatprep.subr.mxu0 %v3892_v6  ;;  %3426 = vmatprep.subr.bf16.mxu1 %v3893_v13 }
  0x12   :  { %v3436_v14 = vpack.c.bf16 %v3972_v11, %v3967_v10  ;;  %v3986_v15 = vld [vmem:[%s4660_s3 + $0x48] sm:$0xff]  ;;  %v3991_v16 = vld [vmem:[%s4660_s3 + $0x50] sm:$0xff]  ;;  %v3996_v17 = vld [vmem:[%s4660_s3 + $0x58] sm:$0xff]  ;;  %3262 = vmatprep.mubr.msk.f32.mxu0 %vm3894_vm1, %v3892_v6  ;;  %3428 = vmatpush3.bf16.msra.mxu1 %v3427_v7 }
  0x13   :  { %v3439_v18 = vpack.c.bf16 %v3986_v15, %v3977_v12  ;;  %v3442_v19 = vpack.c.bf16 %v3996_v17, %v3991_v16  ;;  %v4007_v20 = vld [vmem:[%s4660_s3 + $0x60] sm:$0xff]  ;;  %v4012_v21 = vld [vmem:[%s4660_s3 + $0x68] sm:$0xff]  ;;  %3269 = vmatprep.mubr.msk.f32.mxu1 %vm3894_vm1, %v3892_v6  ;;  %3429 = vmatprep.subr.bf16.mxu1 %v3893_v13  ;;  %v4023_v23 = vld [vmem:[%s4660_s3 + $0x70] sm:$0xff] }
  0x14   :  { %114 = vxpose.xlu0.b32.end [2/2] (short) (narrow) %v37_v2, 8  ;;  %307 = vxpose.xlu1.b32.end [2/2] (short) (narrow) %v3947_v3, 8  ;;  %v3445_v22 = vpack.c.bf16 %v4012_v21, %v4007_v20  ;;  %v4028_v24 = vld [vmem:[%s4660_s3 + $0x78] sm:$0xff]  ;;  %v35_v25 = vld [vmem:[%s4659_s2] sm:$0xff] }
  0x15   :  { %v3448_v26 = vpack.c.bf16 %v4028_v24, %v4023_v23  ;;  %3261 = vmatpush3.xpose.msk.msra.mxu0 %vm38_vm0, %v35_v25 }
  0x16   :  { %15 = vsyncpa [#allocation10], 0  ;;  %3272 = vmatprep.subr.mxu0 %v3892_v6  ;;  %v3044_v27 = vld [vmem:[%s4659_s2 + $0x8] sm:$0xff]  ;;  %v3050_v28 = vld [vmem:[%s4659_s2 + $0x10] sm:$0xff]  ;;  %vm33_vm2 = vcmask 64512   ;;  %s3035_s13 = sld [smem:[#allocation8 + $0x1]] }
  0x17   :  { %v3056_v29 = vld [vmem:[%s4659_s2 + $0x18] sm:$0xff]  ;;  %v3062_v30 = vld [vmem:[%s4659_s2 + $0x20] sm:$0xff]  ;;  %v3068_v31 = vld [vmem:[%s4659_s2 + $0x28] sm:$0xff]  ;;  %34 = vst.msk [vmem:[#allocation2] sm:$0xff] %vm33_vm2, %v3892_v6  ;;  %vm1575_vm3 = vcmask 57344   ;;  %s3895_s16 = smov 16  }
  0x18   :  { %497 = vxpose.xlu0.b32.start [1/2] (short) (narrow) %v3952_v4, 8  ;;  %688 = vxpose.xlu1.b32.start [1/2] (short) (narrow) %v3967_v10, 8  ;;  %v3074_v32 = vld [vmem:[%s4659_s2 + $0x30] sm:$0xff]  ;;  %v3080_v33 = vld [vmem:[%s4659_s2 + $0x38] sm:$0xff]  ;;  %s22_s2 = sld [smem:[#allocation8]]  ;;  %s3896_s17 = smov 8  }
  0x19   :  { %3263 = vmatmul.mubr.msk.f32.vlgmr.msra.gmra.mrb[0].mxu0 %vm38_vm0, %v35_v25  ;;  %s3897_s18 = smov 24   ;;  %s3898_s19 = smov 48   ;;  %vm1581_vm4 = vcmask 123969   ;;  %vm1586_vm5 = vcmask 190594   ;;  %vm1591_vm6 = vcmask 257219   ;;  %vm1596_vm7 = vcmask 323844  }
  0x1a   :  { %3273 = vmatpush3.xpose.msk.msra.mxu0 %vm38_vm0, %v3044_v27  ;;  %3274 = vmatprep.mubr.msk.f32.mxu0 %vm3894_vm1, %v3892_v6  ;;  %s3899_s20 = smov 32   ;;  %s3900_s21 = smov 40   ;;  %vm1601_vm8 = vcmask 390469   ;;  %vm1606_vm9 = vcmask 457094   ;;  %vm1611_vm10 = vcmask 523719  }
  0x1b   :  { %3284 = vmatprep.subr.mxu0 %v3892_v6  ;;  %s3901_s22 = smov 56   ;;  %s3040_s23 = sld [smem:[#allocation8 + $0x6]] }
  0x1c   :  { %498 = vxpose.xlu0.b32.end [2/2] (short) (narrow) %v3957_v5, 8  ;;  %689 = vxpose.xlu1.b32.end [2/2] (short) (narrow) %v3972_v11, 8  ;;  %s4319_s0 = sld [smem:[#allocation8 + $0x3]]  ;;  %s3038_s24 = sld [smem:[#allocation8 + $0x4]] }
  0x1d   :  { %3275 = vmatmul.mubr.msk.f32.vlgmr.msra.gmra.mrb[2].mxu0 %vm38_vm0, %v3044_v27  ;;  %s3036_s3 = sld [smem:[#allocation8 + $0x2]]  ;;  %s3903_s28 = smov [#allocation9]  }
  0x1e   :  { %3285 = vmatpush3.xpose.msk.msra.mxu0 %vm38_vm0, %v3050_v28  ;;  %3286 = vmatprep.mubr.msk.f32.mxu0 %vm3894_vm1, %v3892_v6  ;;  %v4162_v11 = vstv %s22_s2  ;;  %s3027_s29 = sshll.u32 %s3903_s28, 4  ;;  %s3028_s29 = int_to_ptr.vmem [resolvable:$true] %s3027_s29 }
  0x1f   :  { %3296 = vmatprep.subr.mxu0 %v3892_v6  ;;  %s3865_s30 = scalar_lea.vmem %s3028_s29, 16  ;;  %s3869_s5 = scalar_lea.vmem %s3028_s29, 32 }
  0x20   :  { %879 = vxpose.xlu0.b32.start [1/2] (short) (narrow) %v3977_v12, 8  ;;  %1070 = vxpose.xlu1.b32.start [1/2] (short) (narrow) %v3991_v16, 8  ;;  %v4164_v12 = vstv %s3035_s13  ;;  %p3866_p5 = scmp.ne.s32.totalorder %s3028_s29, %s3865_s30  ;;  %p3870_p6 = scmp.lt.s32.totalorder %s3028_s29, %s3028_s29 }
  0x21   :  { %3287 = vmatmul.mubr.msk.f32.vlgmr.msra.gmra.mrb[4].mxu0 %vm38_vm0, %v3050_v28  ;;  %p3871_p7 = scmp.lt.s32.totalorder %s3869_s5, %s3865_s30 }
  0x22   :  { %3297 = vmatpush3.xpose.msk.msra.mxu0 %vm38_vm0, %v3056_v29  ;;  %3298 = vmatprep.mubr.msk.f32.mxu0 %vm3894_vm1, %v3892_v6  ;;  %s1765_s25 = smul.f32 0.015625, %s4319_s0 }
  0x23   :  { %3308 = vmatprep.subr.mxu0 %v3892_v6  ;;  %p3872_p8 = por %p3871_p7, %p3870_p6 }
  0x24   :  { %880 = vxpose.xlu0.b32.end [2/2] (short) (narrow) %v3986_v15, 8  ;;  %1071 = vxpose.xlu1.b32.end [2/2] (short) (narrow) %v3996_v17, 8 }
  0x25   :  { %3299 = vmatmul.mubr.msk.f32.vlgmr.msra.gmra.mrb[6].mxu0 %vm38_vm0, %v3056_v29  ;;  %p3873_p9 = pnand %p3872_p8, %p3866_p5 }
  0x26   :  { %3309 = vmatpush3.xpose.msk.msra.mxu0 %vm38_vm0, %v3062_v30  ;;  %3310 = vmatprep.mubr.msk.f32.mxu0 %vm3894_vm1, %v3892_v6 }
  0x27   :  { %3320 = vmatprep.subr.mxu0 %v3892_v6 }
  0x28   :  { %1261 = vxpose.xlu0.b32.start [1/2] (short) (narrow) %v4007_v20, 8  ;;  %1452 = vxpose.xlu1.b32.start [1/2] (short) (narrow) %v4023_v23, 8 }
  0x29   :  { %3311 = vmatmul.mubr.msk.f32.vlgmr.msra.gmra.mrb[8].mxu0 %vm38_vm0, %v3062_v30 }
  0x2a   :  { %3321 = vmatpush3.xpose.msk.msra.mxu0 %vm38_vm0, %v3068_v31  ;;  %3322 = vmatprep.mubr.msk.f32.mxu0 %vm3894_vm1, %v3892_v6 }
  0x2b   :  { %3332 = vmatprep.subr.mxu0 %v3892_v6 }
  0x2c   :  { %1262 = vxpose.xlu0.b32.end [2/2] (short) (narrow) %v4012_v21, 8  ;;  %1453 = vxpose.xlu1.b32.end [2/2] (short) (narrow) %v4028_v24, 8 }
  0x2d   :  { %3323 = vmatmul.mubr.msk.f32.vlgmr.msra.gmra.mrb[10].mxu0 %vm38_vm0, %v3068_v31 }
  0x2e   :  { %3333 = vmatpush3.xpose.msk.msra.mxu0 %vm38_vm0, %v3074_v32  ;;  %3334 = vmatprep.mubr.msk.f32.mxu0 %vm3894_vm1, %v3892_v6 }
  0x2f   :  { %3344 = vmatprep.subr.mxu0 %v3892_v6 }
  0x31   :  { %3335 = vmatmul.mubr.msk.f32.vlgmr.msra.gmra.mrb[12].mxu0 %vm38_vm0, %v3074_v32 }
  0x32   :  { %3345 = vmatpush3.xpose.msk.msra.mxu0 %vm38_vm0, %v3080_v33  ;;  %3346 = vmatprep.mubr.msk.f32.mxu0 %vm3894_vm1, %v3892_v6 }
  0x33   :  { %3450 = vmatprep.subr.bf16.mxu0 %v3893_v13 }
  0x35   :  { %3347 = vmatmul.mubr.msk.f32.vlgmr.msra.gmra.mrb[14].mxu0 %vm38_vm0, %v3080_v33 }
  0x36   :  { %3388 = vmatprep.mubr.msk.f32.mxu0 %vm3894_vm1, %v3892_v6 }
  0x90   :  { %v129_v34 = vpop.trf.xlu0  ;;  %v322_v35 = vpop.trf.xlu1 }
  0x91   :  { %3270 = vmatmul.mubr.msk.f32.vlgmr.msra.gmra.mrb[0].mxu1 %vm38_vm0, %v129_v34 }
  0x92   :  { %3431 = vmatpush3.bf16.msra.mxu1 %v3430_v8  ;;  %3281 = vmatprep.mubr.msk.f32.mxu1 %vm3894_vm1, %v3892_v6 }
  0x93   :  { %3432 = vmatprep.subr.bf16.mxu1 %v3893_v13 }
  0x95   :  { %3282 = vmatmul.mubr.msk.f32.vlgmr.msra.gmra.mrb[2].mxu1 %vm38_vm0, %v322_v35 }
  0x96   :  { %3434 = vmatpush3.bf16.msra.mxu1 %v3433_v9  ;;  %3293 = vmatprep.mubr.msk.f32.mxu1 %vm3894_vm1, %v3892_v6 }
  0x97   :  { %3435 = vmatprep.subr.bf16.mxu1 %v3893_v13 }
  0x98   :  { %v513_v36 = vpop.trf.xlu0  ;;  %v704_v37 = vpop.trf.xlu1 }
  0x99   :  { %3294 = vmatmul.mubr.msk.f32.vlgmr.msra.gmra.mrb[4].mxu1 %vm38_vm0, %v513_v36 }
  0x9a   :  { %3437 = vmatpush3.bf16.msra.mxu1 %v3436_v14  ;;  %3305 = vmatprep.mubr.msk.f32.mxu1 %vm3894_vm1, %v3892_v6 }
  0x9b   :  { %3438 = vmatprep.subr.bf16.mxu1 %v3893_v13 }
  0x9d   :  { %3306 = vmatmul.mubr.msk.f32.vlgmr.msra.gmra.mrb[6].mxu1 %vm38_vm0, %v704_v37 }
  0x9e   :  { %3440 = vmatpush3.bf16.msra.mxu1 %v3439_v18  ;;  %3317 = vmatprep.mubr.msk.f32.mxu1 %vm3894_vm1, %v3892_v6 }
  0x9f   :  { %3441 = vmatprep.subr.bf16.mxu1 %v3893_v13 }
  0xa0   :  { %v895_v38 = vpop.trf.xlu0  ;;  %v1086_v39 = vpop.trf.xlu1 }
  0xa1   :  { %3318 = vmatmul.mubr.msk.f32.vlgmr.msra.gmra.mrb[8].mxu1 %vm38_vm0, %v895_v38 }
  0xa2   :  { %3443 = vmatpush3.bf16.msra.mxu1 %v3442_v19  ;;  %3329 = vmatprep.mubr.msk.f32.mxu1 %vm3894_vm1, %v3892_v6 }
  0xa3   :  { %3444 = vmatprep.subr.bf16.mxu1 %v3893_v13 }
  0xa5   :  { %3330 = vmatmul.mubr.msk.f32.vlgmr.msra.gmra.mrb[10].mxu1 %vm38_vm0, %v1086_v39 }
  0xa6   :  { %3446 = vmatpush3.bf16.msra.mxu1 %v3445_v22  ;;  %3341 = vmatprep.mubr.msk.f32.mxu1 %vm3894_vm1, %v3892_v6 }
  0xa7   :  { %3447 = vmatprep.subr.bf16.mxu1 %v3893_v13 }
  0xa8   :  { %v1277_v40 = vpop.trf.xlu0  ;;  %v1468_v41 = vpop.trf.xlu1 }
  0xa9   :  { %3342 = vmatmul.mubr.msk.f32.vlgmr.msra.gmra.mrb[12].mxu1 %vm38_vm0, %v1277_v40 }
  0xaa   :  { %3449 = vmatpush3.bf16.msra.mxu1 %v3448_v26  ;;  %3353 = vmatprep.mubr.msk.f32.mxu1 %vm3894_vm1, %v3892_v6 }
  0xab   :  { %3474 = vmatprep.subr.bf16.mxu1 %v3893_v13 }
  0xad   :  { %3354 = vmatmul.mubr.msk.f32.vlgmr.msra.gmra.mrb[14].mxu1 %vm38_vm0, %v1468_v41 }
  0xae   :  { %3423 = vmatprep.mubr.msk.f32.mxu1 %vm3894_vm1, %v3892_v6 }
  0xec   :  { %v108_v42 = vpop.f32.mrb[0].mxu0 }
  0xed   :  { %v3264_v43 = vpop.f32.mrb[1].mxu0  ;;  %v112_v58 = vmul.f32 0.0625, %v108_v42 }
  0xef   :  { %3515 = vtanh.f32 %v112_v58 }
  0xf0   :  { %v301_v44 = vpop.f32.mrb[2].mxu0 }
  0xf1   :  { %v3276_v45 = vpop.f32.mrb[3].mxu0  ;;  %v305_v59 = vmul.f32 0.0625, %v301_v44 }
  0xf3   :  { %3517 = vtanh.f32 %v305_v59 }
  0xf4   :  { %v492_v46 = vpop.f32.mrb[4].mxu0 }
  0xf5   :  { %v3288_v47 = vpop.f32.mrb[5].mxu0  ;;  %v496_v63 = vmul.f32 0.0625, %v492_v46 }
  0xf8   :  { %v683_v48 = vpop.f32.mrb[6].mxu0 }
  0xf9   :  { %v3300_v49 = vpop.f32.mrb[7].mxu0  ;;  %v687_v3 = vmul.f32 0.0625, %v683_v48  ;;  %v3516_v9 = vpop.eup %3515 }
  0xfa   :  { %v221_v19 = vmul.f32 %v3516_v9, %v4162_v11 }
  0xfc   :  { %v874_v50 = vpop.f32.mrb[8].mxu0 }
  0xfd   :  { %v3312_v51 = vpop.f32.mrb[9].mxu0  ;;  %v878_v8 = vmul.f32 0.0625, %v874_v50  ;;  %v3518_v10 = vpop.eup %3517 }
  0xfe   :  { %v413_v21 = vmul.f32 %v3518_v10, %v4162_v11 }
 0x100   :  { %v1065_v52 = vpop.f32.mrb[10].mxu0 }
 0x101   :  { %v3324_v53 = vpop.f32.mrb[11].mxu0  ;;  %v1069_v18 = vmul.f32 0.0625, %v1065_v52 }
 0x104   :  { %v1256_v54 = vpop.f32.mrb[12].mxu0 }
 0x105   :  { %v3336_v55 = vpop.f32.mrb[13].mxu0  ;;  %v1260_v28 = vmul.f32 0.0625, %v1256_v54 }
 0x108   :  { %v1447_v56 = vpop.f32.mrb[14].mxu0 }
 0x109   :  { %v3348_v57 = vpop.f32.mrb[15].mxu0  ;;  %v1451_v38 = vmul.f32 0.0625, %v1447_v56 }
 0x164   :  { %v214_v60 = vpop.f32.mrb[0].mxu1 }
 0x165   :  { %v218_v61 = vmul.f32 0.0625, %v214_v60  ;;  %v3271_v62 = vpop.f32.mrb[1].mxu1 }
 0x167   :  { %3519 = vtanh.f32 %v218_v61 }
 0x168   :  { %v407_v0 = vpop.f32.mrb[2].mxu1  ;;  %3521 = vtanh.f32 %v496_v63 }
 0x169   :  { %v411_v1 = vmul.f32 0.0625, %v407_v0  ;;  %v3283_v2 = vpop.f32.mrb[3].mxu1 }
 0x16b   :  { %3523 = vtanh.f32 %v411_v1 }
 0x16c   :  { %v598_v4 = vpop.f32.mrb[4].mxu1  ;;  %3525 = vtanh.f32 %v687_v3 }
 0x16d   :  { %v602_v5 = vmul.f32 0.0625, %v598_v4  ;;  %v3295_v7 = vpop.f32.mrb[5].mxu1 }
 0x16f   :  { %3527 = vtanh.f32 %v602_v5 }
 0x170   :  { %v789_v14 = vpop.f32.mrb[6].mxu1  ;;  %3529 = vtanh.f32 %v878_v8 }
 0x171   :  { %v3520_v15 = vpop.eup %3519  ;;  %v793_v16 = vmul.f32 0.0625, %v789_v14  ;;  %v3307_v17 = vpop.f32.mrb[7].mxu1 }
 0x172   :  { %v225_v20 = vmul.f32 %v3520_v15, %v4164_v12  ;;  %v3522_v22 = vpop.eup %3521 }
 0x173   :  { %3531 = vtanh.f32 %v793_v16  ;;  %v604_v31 = vmul.f32 %v3522_v22, %v4162_v11  ;;  %v1564_v16 = vld [vmem:[#allocation2] sm:$0xff] }
 0x174   :  { %v226_v23 = vadd.f32 %v225_v20, %v221_v19  ;;  %v980_v24 = vpop.f32.mrb[8].mxu1  ;;  %3533 = vtanh.f32 %v1069_v18  ;;  %v1572_v19 = vld [vmem:[%s4658_s1] sm:$0xff]  ;;  %s4188_s1 = sld [smem:[#allocation8 + $0x5]] }
 0x175   :  { %v3524_v25 = vpop.eup %3523  ;;  %v984_v26 = vmul.f32 0.0625, %v980_v24  ;;  %v3319_v27 = vpop.f32.mrb[9].mxu1  ;;  %v1614_v24 = vlaneseq }
 0x176   :  { %v414_v29 = vadd.f32 %v413_v21, %v226_v23  ;;  %v416_v30 = vmul.f32 %v3524_v25, %v4164_v12  ;;  %v3526_v32 = vpop.eup %3525 }
 0x177   :  { %3535 = vtanh.f32 %v984_v26  ;;  %v795_v41 = vmul.f32 %v3526_v32, %v4162_v11  ;;  %v4186_v27 = vshrl.u32 %v1614_v24, 7 }
 0x178   :  { %v417_v33 = vadd.f32 %v416_v30, %v414_v29  ;;  %v1171_v34 = vpop.f32.mrb[10].mxu1  ;;  %3537 = vtanh.f32 %v1260_v28  ;;  %v4190_v29 = vand.u32 127, %v1614_v24 }
 0x179   :  { %v3528_v35 = vpop.eup %3527  ;;  %v1175_v36 = vmul.f32 0.0625, %v1171_v34  ;;  %v3331_v37 = vpop.f32.mrb[11].mxu1  ;;  %v1631_v30 = vadd.s32 8, %v4186_v27  ;;  %v1634_v32 = vadd.s32 32, %v4186_v27 }
 0x17a   :  { %v605_v39 = vadd.f32 %v604_v31, %v417_v33  ;;  %v607_v40 = vmul.f32 %v3528_v35, %v4164_v12  ;;  %v3530_v42 = vpop.eup %3529  ;;  %v1697_v31 = vsub.s32 0, %v4186_v27  ;;  %vm1646_vm12 = vcmp.eq.s32.totalorder %v4186_v27, %v4190_v29  ;;  %s1766_s26 = smul.f32 0.015625, %s4188_s1 }
 0x17b   :  { %3539 = vtanh.f32 %v1175_v36  ;;  %v986_v50 = vmul.f32 %v3530_v42, %v4162_v11  ;;  %vm1647_vm11 = vcmp.eq.s32.totalorder %v1631_v30, %v4190_v29  ;;  %v1632_v33 = vadd.s32 16, %v4186_v27 }
 0x17c   :  { %v608_v43 = vadd.f32 %v607_v40, %v605_v39  ;;  %v1362_v44 = vpop.f32.mrb[12].mxu1  ;;  %3541 = vtanh.f32 %v1451_v38  ;;  %v4200_v34 = vstv %s4188_s1  ;;  %v4202_v35 = vstv %s3040_s23 }
 0x17d   :  { %v3532_v45 = vpop.eup %3531  ;;  %v1366_v46 = vmul.f32 0.0625, %v1362_v44  ;;  %v3343_v47 = vpop.f32.mrb[13].mxu1  ;;  %v4205_v37 = vsel %vm1647_vm11, 1.0, %v3892_v6  ;;  %v4208_v38 = vsel %vm1646_vm12, 1.0, %v3892_v6  ;;  %v1636_v39 = vadd.s32 48, %v4186_v27 }
 0x17e   :  { %v796_v48 = vadd.f32 %v795_v41, %v608_v43  ;;  %v798_v49 = vmul.f32 %v3532_v45, %v4164_v12  ;;  %v3534_v51 = vpop.eup %3533  ;;  %v1633_v40 = vadd.s32 24, %v4186_v27  ;;  %vm1650_vm13 = vcmp.eq.s32.totalorder %v1634_v32, %v4190_v29 }
 0x17f   :  { %3543 = vtanh.f32 %v1366_v46  ;;  %v1177_v59 = vmul.f32 %v3534_v51, %v4162_v11  ;;  %vm1648_vm14 = vcmp.eq.s32.totalorder %v1632_v33, %v4190_v29  ;;  %v4225_v46 = vsel %vm1650_vm13, 1.0, %v3892_v6 }
 0x180   :  { %v799_v52 = vadd.f32 %v798_v49, %v796_v48  ;;  %v1553_v53 = vpop.f32.mrb[14].mxu1  ;;  %v4228_v47 = vsel %vm1648_vm14, 1.0, %v3892_v6  ;;  %v1638_v48 = vadd.s32 64, %v4186_v27  ;;  %vm1652_vm15 = vcmp.eq.s32.totalorder %v1636_v39, %v4190_v29 }
 0x181   :  { %v3536_v54 = vpop.eup %3535  ;;  %v1557_v55 = vmul.f32 0.0625, %v1553_v53  ;;  %v3355_v56 = vpop.f32.mrb[15].mxu1  ;;  %vm1649_vm0 = vcmp.eq.s32.totalorder %v1633_v40, %v4190_v29  ;;  %v4239_v53 = vsel %vm1652_vm15, 1.0, %v3892_v6  ;;  %vm1748_vm12 = vcmask 7168  }
 0x182   :  { %v987_v57 = vadd.f32 %v986_v50, %v799_v52  ;;  %v989_v58 = vmul.f32 %v3536_v54, %v4164_v12  ;;  %v3538_v60 = vpop.eup %3537  ;;  %v1635_v50 = vadd.s32 40, %v4186_v27  ;;  %v4242_v54 = vsel %vm1649_vm0, 1.0, %v3892_v6 }
 0x183   :  { %3545 = vtanh.f32 %v1557_v55  ;;  %v1368_v1 = vmul.f32 %v3538_v60, %v4162_v11  ;;  %vm1654_vm1 = vcmp.eq.s32.totalorder %v1638_v48, %v4190_v29  ;;  %v1640_v55 = vadd.s32 80, %v4186_v27 }
 0x184   :  { %v990_v61 = vadd.f32 %v989_v58, %v987_v57  ;;  %v1637_v56 = vadd.s32 56, %v4186_v27  ;;  %vm3000_vm13 = vcmask 1040384  }
 0x185   :  { %v3540_v62 = vpop.eup %3539 }
 0x186   :  { %v1178_v63 = vadd.f32 %v1177_v59, %v990_v61  ;;  %v1180_v0 = vmul.f32 %v3540_v62, %v4164_v12  ;;  %v3542_v2 = vpop.eup %3541  ;;  %v4253_v59 = vsel %vm1654_vm1, 1.0, %v3892_v6  ;;  %v1642_v61 = vadd.s32 96, %v4186_v27 }
 0x187   :  { %v1559_v8 = vmul.f32 %v3542_v2, %v4162_v11  ;;  %v1639_v62 = vadd.s32 72, %v4186_v27 }
 0x188   :  { %v1181_v3 = vadd.f32 %v1180_v0, %v1178_v63 }
 0x189   :  { %v3544_v4 = vpop.eup %3543 }
 0x18a   :  { %v1369_v5 = vadd.f32 %v1368_v1, %v1181_v3  ;;  %v1371_v7 = vmul.f32 %v3544_v4, %v4164_v12  ;;  %v1644_v4 = vadd.s32 112, %v4186_v27 }
 0x18c   :  { %v1372_v9 = vadd.f32 %v1371_v7, %v1369_v5  ;;  %v1641_v5 = vadd.s32 88, %v4186_v27 }
 0x18d   :  { %v3546_v10 = vpop.eup %3545 }
 0x18e   :  { %v1560_v14 = vadd.f32 %v1559_v8, %v1372_v9  ;;  %v1562_v15 = vmul.f32 %v3546_v10, %v4164_v12 }
 0x190   :  { %v1563_v17 = vadd.f32 %v1562_v15, %v1560_v14  ;;  %v1643_v15 = vadd.s32 104, %v4186_v27 }
 0x192   :  { %v1565_v18 = vadd.f32 %v1564_v16, %v1563_v17 }
 0x194   :  { %1567 = vst.msk [vmem:[#allocation2] sm:$0xff] %vm33_vm2, %v1565_v18  ;;  %vm1651_vm2 = vcmp.eq.s32.totalorder %v1635_v50, %v4190_v29 }
 0x195   :  { %v4256_v60 = vsel %vm1651_vm2, 1.0, %v3892_v6 }
 0x19b   :  { %v1571_v20 = vld [vmem:[#allocation2] sm:$0xff] }
 0x19c   :  { %v1573_v21 = vadd.f32 %v1572_v19, %v1571_v20  ;;  %v1645_v20 = vadd.s32 120, %v4186_v27 }
 0x19e   :  { %1583 = vrot.lane.b32.xlu1 %v1573_v21, %s3895_s16  ;;  %1578 = vrot.lane.b32.xlu0 %v1573_v21, %s3896_s17  ;;  %1576 = vst.msk [vmem:[#allocation3] sm:$0x1] %vm1575_vm3, %v1573_v21  ;;  %vm1656_vm3 = vcmp.eq.s32.totalorder %v1640_v55, %v4190_v29  ;;  %vm1661_vm11 = vcmp.eq.s32.totalorder %v1645_v20, %v4190_v29 }
 0x19f   :  { %v4267_v1 = vsel %vm1656_vm3, 1.0, %v3892_v6 }
 0x1a2   :  { %1588 = vrot.lane.b32.xlu1 %v1573_v21, %s3897_s18  ;;  %1603 = vrot.lane.b32.xlu0 %v1573_v21, %s3898_s19 }
 0x1a6   :  { %1593 = vrot.lane.b32.xlu1 %v1573_v21, %s3899_s20 }
 0x1aa   :  { %1598 = vrot.lane.b32.xlu1 %v1573_v21, %s3900_s21 }
 0x1ae   :  { %1608 = vrot.lane.b32.xlu1 %v1573_v21, %s3901_s22 }
 0x210   :  { %v1584_v11 = vpop.permute.xlu1 %1583  ;;  %v1579_v12 = vpop.permute.xlu0 %1578 }
 0x211   :  { %1582 = vst.msk [vmem:[#allocation3 - $0x1] sm:$0x2] %vm1581_vm4, %v1579_v12  ;;  %vm1653_vm4 = vcmp.eq.s32.totalorder %v1637_v56, %v4190_v29 }
 0x212   :  { %1587 = vst.msk [vmem:[#allocation3 - $0x2] sm:$0x4] %vm1586_vm5, %v1584_v11  ;;  %v4270_v2 = vsel %vm1653_vm4, 1.0, %v3892_v6  ;;  %vm1658_vm5 = vcmp.eq.s32.totalorder %v1642_v61, %v4190_v29 }
 0x213   :  { %v4281_v10 = vsel %vm1658_vm5, 1.0, %v3892_v6 }
 0x214   :  { %v1589_v22 = vpop.permute.xlu1 %1588  ;;  %v1604_v26 = vpop.permute.xlu0 %1603 }
 0x215   :  { %1592 = vst.msk [vmem:[#allocation3 - $0x3] sm:$0x8] %vm1591_vm6, %v1589_v22  ;;  %vm1655_vm6 = vcmp.eq.s32.totalorder %v1639_v62, %v4190_v29 }
 0x216   :  { %v4284_v14 = vsel %vm1655_vm6, 1.0, %v3892_v6 }
 0x218   :  { %v1594_v23 = vpop.permute.xlu1 %1593 }
 0x219   :  { %1597 = vst.msk [vmem:[#allocation3 - $0x4] sm:$0x10] %vm1596_vm7, %v1594_v23  ;;  %vm1660_vm7 = vcmp.eq.s32.totalorder %v1644_v4, %v4190_v29 }
 0x21a   :  { %v4294_v18 = vsel %vm1660_vm7, 1.0, %v3892_v6 }
 0x21c   :  { %v1599_v25 = vpop.permute.xlu1 %1598 }
 0x21d   :  { %1602 = vst.msk [vmem:[#allocation3 - $0x5] sm:$0x20] %vm1601_vm8, %v1599_v25  ;;  %vm1657_vm8 = vcmp.eq.s32.totalorder %v1641_v5, %v4190_v29  ;;  %v4315_v25 = vsel %vm1661_vm11, 1.0, %v3892_v6 }
 0x21e   :  { %1607 = vst.msk [vmem:[#allocation3 - $0x6] sm:$0x40] %vm1606_vm9, %v1604_v26  ;;  %v4297_v19 = vsel %vm1657_vm8, 1.0, %v3892_v6  ;;  %vm1659_vm9 = vcmp.eq.s32.totalorder %v1643_v15, %v4190_v29 }
 0x21f   :  { %v4307_v12 = vsel %vm1659_vm9, 1.0, %v3892_v6 }
 0x220   :  { %v1609_v28 = vpop.permute.xlu1 %1608 }
 0x221   :  { %1612 = vst.msk [vmem:[#allocation3 - $0x7] sm:$0x80] %vm1611_vm10, %v1609_v28  ;;  %vm1616_vm10 = vcmp.lt.s32.totalorder %v4190_v29, 64  ;;  %v3902_v28 = vmov 0  }
 0x222   :  { %3513 = vset.pattern.permute.xlu1 %v3902_v28  ;;  %3514 = vset.pattern.permute.xlu0 %v3902_v28 }
 0x228   :  { %v1613_v36 = vld [vmem:[#allocation3] sm:$0x1] }
 0x229   :  { %v1618_v41 = vmul.f32 %v4200_v34, %v1613_v36  ;;  %v4215_v42 = vrot.slane %v1613_v36, %v1697_v31 }
 0x22b   :  { %v1620_v43 = vadd.f32 %v4202_v35, %v1618_v41  ;;  %v1701_v44 = vmul.f32 %v4205_v37, %v4215_v42  ;;  %v1700_v45 = vmul.f32 %v4208_v38, %v4215_v42  ;;  %v1704_v51 = vmul.f32 %v4225_v46, %v4215_v42 }
 0x22c   :  { %v1702_v52 = vmul.f32 %v4228_v47, %v4215_v42  ;;  %v1706_v57 = vmul.f32 %v4239_v53, %v4215_v42  ;;  %v1703_v58 = vmul.f32 %v4242_v54, %v4215_v42  ;;  %v1708_v63 = vmul.f32 %v4253_v59, %v4215_v42 }
 0x22d   :  { %v3086_v49 = vmul.f32 -1.442695, %v1620_v43  ;;  %1718 = vadd.xlane.f32.xlu1 %v1701_v44  ;;  %1716 = vadd.xlane.f32.xlu0 %v1700_v45  ;;  %v1705_v0 = vmul.f32 %v4256_v60, %v4215_v42  ;;  %v1710_v8 = vmul.f32 %v4267_v1, %v4215_v42  ;;  %v1707_v9 = vmul.f32 %v4270_v2, %v4215_v42 }
 0x22e   :  { %v1712_v16 = vmul.f32 %v4281_v10, %v4215_v42  ;;  %v1709_v17 = vmul.f32 %v4284_v14, %v4215_v42  ;;  %v1714_v21 = vmul.f32 %v4294_v18, %v4215_v42  ;;  %v1711_v11 = vmul.f32 %v4297_v19, %v4215_v42 }
 0x22f   :  { %3547 = vpow2.f32 %v3086_v49  ;;  %v1713_v24 = vmul.f32 %v4307_v12, %v4215_v42  ;;  %v1715_v26 = vmul.f32 %v4315_v25, %v4215_v42  ;;  %v4328_v41 = vstv %s4319_s0 }
 0x230   :  { %v4338_v45 = vstv %s3038_s24 }
 0x231   :  { %1724 = vadd.xlane.f32.xlu1 %v1704_v51  ;;  %1720 = vadd.xlane.f32.xlu0 %v1702_v52 }
 0x235   :  { %1728 = vadd.xlane.f32.xlu1 %v1706_v57  ;;  %1722 = vadd.xlane.f32.xlu0 %v1703_v58 }
 0x239   :  { %v3548_v3 = vpop.eup %3547  ;;  %1732 = vadd.xlane.f32.xlu1 %v1708_v63  ;;  %1726 = vadd.xlane.f32.xlu0 %v1705_v0 }
 0x23a   :  { %v1624_v7 = vadd.f32 1.0, %v3548_v3 }
 0x23c   :  { %3549 = vrcp.f32 %v1624_v7 }
 0x23d   :  { %1736 = vadd.xlane.f32.xlu1 %v1710_v8  ;;  %1730 = vadd.xlane.f32.xlu0 %v1707_v9 }
 0x241   :  { %1740 = vadd.xlane.f32.xlu1 %v1712_v16  ;;  %1734 = vadd.xlane.f32.xlu0 %v1709_v17 }
 0x245   :  { %1744 = vadd.xlane.f32.xlu1 %v1714_v21  ;;  %1738 = vadd.xlane.f32.xlu0 %v1711_v11 }
 0x246   :  { %v3550_v22 = vpop.eup %3549 }
 0x247   :  { %v1627_v23 = vsel %vm1616_vm10, %v3550_v22, 0.0 }
 0x248   :  { %1628 = vst [vmem:[#allocation4] sm:$0x1] %v1627_v23 }
 0x249   :  { %1742 = vadd.xlane.f32.xlu0 %v1713_v24 }
 0x24d   :  { %1746 = vadd.xlane.f32.xlu0 %v1715_v26 }
 0x2ba   :  { %v1719_v30 = vpop.xlane.xlu1 %1718  ;;  %v1717_v32 = vpop.xlane.xlu0 %1716 }
 0x2bb   :  { %1750 = vst.msk [vmem:[#allocation5 + $0x8] sm:$0xff] %vm1748_vm12, %v1719_v30  ;;  %1749 = vst.msk [vmem:[#allocation5] sm:$0xff] %vm1748_vm12, %v1717_v32 }
 0x2be   :  { %v1725_v6 = vpop.xlane.xlu1 %1724  ;;  %v1721_v33 = vpop.xlane.xlu0 %1720 }
 0x2bf   :  { %1753 = vst.msk [vmem:[#allocation5 + $0x20] sm:$0xff] %vm1748_vm12, %v1725_v6  ;;  %1751 = vst.msk [vmem:[#allocation5 + $0x10] sm:$0xff] %vm1748_vm12, %v1721_v33 }
 0x2c2   :  { %v1729_v36 = vpop.xlane.xlu1 %1728  ;;  %v1723_v39 = vpop.xlane.xlu0 %1722  ;;  %v4325_v40 = vld [vmem:[#allocation5 + $0x8] sm:$0xff]  ;;  %v4330_v42 = vld [vmem:[#allocation5] sm:$0xff] }
 0x2c3   :  { %1755 = vst.msk [vmem:[#allocation5 + $0x30] sm:$0xff] %vm1748_vm12, %v1729_v36  ;;  %1752 = vst.msk [vmem:[#allocation5 + $0x18] sm:$0xff] %vm1748_vm12, %v1723_v39  ;;  %v1785_v43 = vmul.f32 %v4328_v41, %v4325_v40  ;;  %v1784_v44 = vmul.f32 %v4328_v41, %v4330_v42 }
 0x2c5   :  { %v1802_v48 = vadd.f32 %v4338_v45, %v1785_v43  ;;  %v1801_v49 = vadd.f32 %v4338_v45, %v1784_v44 }
 0x2c6   :  { %v1733_v50 = vpop.xlane.xlu1 %1732  ;;  %v1727_v51 = vpop.xlane.xlu0 %1726  ;;  %v4342_v52 = vld [vmem:[#allocation5 + $0x10] sm:$0xff]  ;;  %v4344_v55 = vld [vmem:[#allocation5 + $0x20] sm:$0xff] }
 0x2c7   :  { %1757 = vst.msk [vmem:[#allocation5 + $0x40] sm:$0xff] %vm1748_vm12, %v1733_v50  ;;  %1754 = vst.msk [vmem:[#allocation5 + $0x28] sm:$0xff] %vm1748_vm12, %v1727_v51  ;;  %v4348_v56 = vmul.f32 -1.442695, %v1802_v48  ;;  %v4350_v57 = vmul.f32 -1.442695, %v1801_v49  ;;  %v1786_v58 = vmul.f32 %v4328_v41, %v4342_v52  ;;  %v1788_v61 = vmul.f32 %v4328_v41, %v4344_v55 }
 0x2c9   :  { %3551 = vpow2.f32 %v4348_v56  ;;  %v1803_v62 = vadd.f32 %v4338_v45, %v1786_v58  ;;  %v1805_v7 = vadd.f32 %v4338_v45, %v1788_v61 }
 0x2ca   :  { %v1737_v63 = vpop.xlane.xlu1 %1736  ;;  %v1731_v0 = vpop.xlane.xlu0 %1730  ;;  %v4358_v3 = vld [vmem:[#allocation5 + $0x18] sm:$0xff]  ;;  %3553 = vpow2.f32 %v4350_v57  ;;  %v4368_v8 = vld [vmem:[#allocation5 + $0x30] sm:$0xff] }
 0x2cb   :  { %1759 = vst.msk [vmem:[#allocation5 + $0x50] sm:$0xff] %vm1748_vm12, %v1737_v63  ;;  %1756 = vst.msk [vmem:[#allocation5 + $0x38] sm:$0xff] %vm1748_vm12, %v1731_v0  ;;  %v4363_v4 = vmul.f32 -1.442695, %v1803_v62  ;;  %v1787_v5 = vmul.f32 %v4328_v41, %v4358_v3  ;;  %v4378_v21 = vmul.f32 -1.442695, %v1805_v7  ;;  %v1790_v22 = vmul.f32 %v4328_v41, %v4368_v8 }
 0x2cd   :  { %3555 = vpow2.f32 %v4363_v4  ;;  %v1804_v9 = vadd.f32 %v4338_v45, %v1787_v5  ;;  %v1807_v6 = vadd.f32 %v4338_v45, %v1790_v22 }
 0x2ce   :  { %v1741_v15 = vpop.xlane.xlu1 %1740  ;;  %v1735_v16 = vpop.xlane.xlu0 %1734  ;;  %v4372_v17 = vld [vmem:[#allocation5 + $0x28] sm:$0xff]  ;;  %v1775_v5 = vld [vmem:[#allocation5 + $0x40] sm:$0xff] }
 0x2cf   :  { %1761 = vst.msk [vmem:[#allocation5 + $0x60] sm:$0xff] %vm1748_vm12, %v1741_v15  ;;  %1758 = vst.msk [vmem:[#allocation5 + $0x48] sm:$0xff] %vm1748_vm12, %v1735_v16  ;;  %v4376_v20 = vmul.f32 -1.442695, %v1804_v9  ;;  %v1789_v11 = vmul.f32 %v4328_v41, %v4372_v17  ;;  %v4396_v51 = vmul.f32 -1.442695, %v1807_v6 }
 0x2d1   :  { %3557 = vpow2.f32 %v4376_v20  ;;  %v1806_v23 = vadd.f32 %v4338_v45, %v1789_v11 }
 0x2d2   :  { %v1745_v24 = vpop.xlane.xlu1 %1744  ;;  %v1739_v26 = vpop.xlane.xlu0 %1738  ;;  %v1777_v28 = vld [vmem:[#allocation5 + $0x50] sm:$0xff]  ;;  %3559 = vpow2.f32 %v4378_v21  ;;  %v4399_v62 = vld [vmem:[#allocation5 + $0x38] sm:$0xff] }
 0x2d3   :  { %v3552_v30 = vpop.eup %3551  ;;  %1763 = vst.msk [vmem:[#allocation5 + $0x70] sm:$0xff] %vm1748_vm12, %v1745_v24  ;;  %1760 = vst.msk [vmem:[#allocation5 + $0x58] sm:$0xff] %vm1748_vm12, %v1739_v26  ;;  %v4389_v32 = vmul.f32 -1.442695, %v1806_v23  ;;  %v1794_v36 = vmul.f32 %v4328_v41, %v1777_v28  ;;  %v1791_v16 = vmul.f32 %v4328_v41, %v4399_v62  ;;  %v1792_v26 = vmul.f32 %v4328_v41, %v1775_v5 }
 0x2d4   :  { %v1866_v33 = vadd.f32 1.0, %v3552_v30  ;;  %v3554_v39 = vpop.eup %3553 }
 0x2d5   :  { %v1865_v44 = vadd.f32 1.0, %v3554_v39  ;;  %v1811_v61 = vadd.f32 %v4338_v45, %v1794_v36  ;;  %v1808_v6 = vadd.f32 %v4338_v45, %v1791_v16 }
 0x2d6   :  { %v1743_v43 = vpop.xlane.xlu0 %1742  ;;  %3561 = vrcp.f32 %v1866_v33  ;;  %v1779_v48 = vld [vmem:[#allocation5 + $0x60] sm:$0xff]  ;;  %v1776_v23 = vld [vmem:[#allocation5 + $0x48] sm:$0xff] }
 0x2d7   :  { %v3556_v49 = vpop.eup %3555  ;;  %1762 = vst.msk [vmem:[#allocation5 + $0x68] sm:$0xff] %vm1748_vm12, %v1743_v43  ;;  %3563 = vpow2.f32 %v4389_v32  ;;  %v1796_v50 = vmul.f32 %v4328_v41, %v1779_v48  ;;  %v4407_v22 = vmul.f32 -1.442695, %v1811_v61  ;;  %v1793_v33 = vmul.f32 %v4328_v41, %v1776_v23 }
 0x2d8   :  { %3565 = vrcp.f32 %v1865_v44  ;;  %v1867_v58 = vadd.f32 1.0, %v3556_v49  ;;  %v1809_v48 = vadd.f32 %v4338_v45, %v1792_v26 }
 0x2d9   :  { %v1813_v9 = vadd.f32 %v4338_v45, %v1796_v50  ;;  %v1810_v61 = vadd.f32 %v4338_v45, %v1793_v33 }
 0x2da   :  { %v1747_v63 = vpop.xlane.xlu0 %1746  ;;  %3567 = vrcp.f32 %v1867_v58  ;;  %v1781_v0 = vld [vmem:[#allocation5 + $0x70] sm:$0xff]  ;;  %v1778_v43 = vld [vmem:[#allocation5 + $0x58] sm:$0xff]  ;;  %v4420_v58 = vmul.f32 -1.442695, %v1808_v6 }
 0x2db   :  { %v3558_v7 = vpop.eup %3557  ;;  %1764 = vst.msk [vmem:[#allocation5 + $0x78] sm:$0xff] %vm1748_vm12, %v1747_v63  ;;  %3569 = vpow2.f32 %v4396_v51  ;;  %v1798_v15 = vmul.f32 %v4328_v41, %v1781_v0  ;;  %v4411_v30 = vmul.f32 -1.442695, %v1813_v9  ;;  %v1795_v63 = vmul.f32 %v4328_v41, %v1778_v43 }
 0x2dc   :  { %v1868_v11 = vadd.f32 1.0, %v3558_v7  ;;  %v3560_v24 = vpop.eup %3559 }
 0x2dd   :  { %v1815_v28 = vadd.f32 %v4338_v45, %v1798_v15  ;;  %v1869_v39 = vadd.f32 1.0, %v3560_v24  ;;  %v4424_v15 = vmul.f32 -1.442695, %v1809_v48  ;;  %v1812_v23 = vadd.f32 %v4338_v45, %v1795_v63 }
 0x2de   :  { %3571 = vrcp.f32 %v1868_v11  ;;  %v1780_v0 = vld [vmem:[#allocation5 + $0x68] sm:$0xff]  ;;  %v4429_v11 = vmul.f32 -1.442695, %v1810_v61 }
 0x2df   :  { %3573 = vpow2.f32 %v4407_v22  ;;  %v4417_v50 = vmul.f32 -1.442695, %v1815_v28  ;;  %v1797_v16 = vmul.f32 %v4328_v41, %v1780_v0 }
 0x2e0   :  { %v3562_v36 = vpop.eup %3561  ;;  %3575 = vpow2.f32 %v4411_v30 }
 0x2e1   :  { %v3564_v44 = vpop.eup %3563  ;;  %2098 = vperm.xlu0 %3514, %v3562_v36   ;;  %3577 = vrcp.f32 %v1869_v39  ;;  %v1814_v33 = vadd.f32 %v4338_v45, %v1797_v16  ;;  %v4435_v39 = vmul.f32 -1.442695, %v1812_v23 }
 0x2e2   :  { %v3566_v49 = vpop.eup %3565  ;;  %v1870_v7 = vadd.f32 1.0, %v3564_v44  ;;  %3579 = vpow2.f32 %v4417_v50  ;;  %v1782_v28 = vld [vmem:[#allocation5 + $0x78] sm:$0xff] }
 0x2e3   :  { %2093 = vperm.xlu1 %3513, %v3566_v49   ;;  %3581 = vpow2.f32 %v4420_v58  ;;  %v1799_v43 = vmul.f32 %v4328_v41, %v1782_v28  ;;  %v4438_v61 = vmul.f32 -1.442695, %v1814_v33 }
 0x2e4   :  { %v3568_v5 = vpop.eup %3567  ;;  %3583 = vrcp.f32 %v1870_v7 }
 0x2e5   :  { %v3570_v9 = vpop.eup %3569  ;;  %3585 = vpow2.f32 %v4424_v15  ;;  %v1816_v63 = vadd.f32 %v4338_v45, %v1799_v43 }
 0x2e6   :  { %v1871_v26 = vadd.f32 1.0, %v3570_v9  ;;  %3587 = vpow2.f32 %v4429_v11 }
 0x2e7   :  { %2103 = vperm.xlu1 %3513, %v3568_v5  }
 0x2e8   :  { %v3572_v24 = vpop.eup %3571  ;;  %3589 = vrcp.f32 %v1871_v26 }
 0x2e9   :  { %v3574_v6 = vpop.eup %3573 }
 0x2ea   :  { %v1875_v36 = vadd.f32 1.0, %v3574_v6  ;;  %v3576_v44 = vpop.eup %3575  ;;  %v1913_v6 = vmul.f32 %v4330_v42, %v4200_v34 }
 0x2eb   :  { %2108 = vperm.xlu1 %3513, %v3572_v24   ;;  %v3578_v48 = vpop.eup %3577  ;;  %v1877_v49 = vadd.f32 1.0, %v3576_v44  ;;  %v3118_v24 = vmul.f32 -1.442695, %v1816_v63  ;;  %v1914_v63 = vmul.f32 %v4325_v40, %v4200_v34 }
 0x2ec   :  { %3591 = vrcp.f32 %v1875_v36  ;;  %v3580_v0 = vpop.eup %3579 }
 0x2ed   :  { %3593 = vpow2.f32 %v4435_v39  ;;  %v3582_v5 = vpop.eup %3581  ;;  %v1879_v7 = vadd.f32 1.0, %v3580_v0 }
 0x2ee   :  { %3595 = vrcp.f32 %v1877_v49  ;;  %v3584_v9 = vpop.eup %3583  ;;  %v1872_v16 = vadd.f32 1.0, %v3582_v5 }
 0x2ef   :  { %2113 = vperm.xlu1 %3513, %v3578_v48   ;;  %3597 = vpow2.f32 %v4438_v61  ;;  %v3586_v23 = vpop.eup %3585  ;;  %v1929_v48 = vadd.f32 %v1913_v6, %v4202_v35  ;;  %v1916_v6 = vmul.f32 %v4358_v3, %v4200_v34 }
 0x2f0   :  { %3599 = vrcp.f32 %v1879_v7  ;;  %v1873_v26 = vadd.f32 1.0, %v3586_v23  ;;  %v3588_v28 = vpop.eup %3587  ;;  %v1915_v23 = vmul.f32 %v4342_v52, %v4200_v34 }
 0x2f1   :  { %3601 = vrcp.f32 %v1872_v16  ;;  %v1874_v43 = vadd.f32 1.0, %v3588_v28  ;;  %v3119_v7 = vmul.f32 -1.442695, %v1929_v48  ;;  %v1930_v16 = vadd.f32 %v1914_v63, %v4202_v35 }
 0x2f2   :  { %v3590_v33 = vpop.eup %3589  ;;  %3603 = vpow2.f32 %v3118_v24  ;;  %v1931_v28 = vadd.f32 %v1915_v23, %v4202_v35  ;;  %v1919_v23 = vmul.f32 %v4368_v8, %v4200_v34 }
 0x2f3   :  { %2118 = vperm.xlu1 %3513, %v3584_v9   ;;  %3605 = vrcp.f32 %v1873_v26  ;;  %v3120_v26 = vmul.f32 -1.442695, %v1930_v16 }
 0x2f4   :  { %3607 = vpow2.f32 %v4350_v57 }
 0x2f5   :  { %3609 = vrcp.f32 %v1874_v43  ;;  %v3121_v43 = vmul.f32 -1.442695, %v1931_v28  ;;  %v1920_v28 = vmul.f32 %v4399_v62, %v4200_v34 }
 0x2f6   :  { %v3592_v36 = vpop.eup %3591  ;;  %3611 = vpow2.f32 %v4348_v56  ;;  %v1917_v56 = vmul.f32 %v4344_v55, %v4200_v34 }
 0x2f7   :  { %2123 = vperm.xlu1 %3513, %v3590_v33   ;;  %2143 = vperm.xlu0 %3514, %v3592_v36   ;;  %v3594_v44 = vpop.eup %3593 }
 0x2f8   :  { %v3596_v49 = vpop.eup %3595  ;;  %v1876_v42 = vadd.f32 1.0, %v3594_v44  ;;  %v1932_v44 = vadd.f32 %v1916_v6, %v4202_v35 }
 0x2f9   :  { %v3598_v0 = vpop.eup %3597 }
 0x2fa   :  { %v3600_v5 = vpop.eup %3599  ;;  %3613 = vrcp.f32 %v1876_v42  ;;  %v1878_v40 = vadd.f32 1.0, %v3598_v0  ;;  %v3122_v63 = vmul.f32 -1.442695, %v1932_v44  ;;  %v1918_v0 = vmul.f32 %v4372_v17, %v4200_v34 }
 0x2fb   :  { %2153 = vperm.xlu0 %3514, %v3596_v49   ;;  %v3602_v9 = vpop.eup %3601  ;;  %3615 = vpow2.f32 %v3119_v7  ;;  %v1933_v49 = vadd.f32 %v1917_v56, %v4202_v35 }
 0x2fc   :  { %2128 = vperm.xlu1 %3513, %v3602_v9   ;;  %v3604_v24 = vpop.eup %3603  ;;  %3617 = vpow2.f32 %v4376_v20  ;;  %v1934_v16 = vadd.f32 %v1918_v0, %v4202_v35 }
 0x2fd   :  { %v3606_v57 = vpop.eup %3605  ;;  %3619 = vrcp.f32 %v1878_v40  ;;  %v1880_v52 = vadd.f32 1.0, %v3604_v24  ;;  %v3123_v7 = vmul.f32 -1.442695, %v1933_v49 }
 0x2fe   :  { %v3608_v33 = vpop.eup %3607  ;;  %3621 = vpow2.f32 %v3120_v26  ;;  %v1935_v26 = vadd.f32 %v1919_v23, %v4202_v35 }
 0x2ff   :  { %2163 = vperm.xlu0 %3514, %v3600_v5   ;;  %v3610_v36 = vpop.eup %3609  ;;  %3623 = vpow2.f32 %v4389_v32  ;;  %v2591_v48 = vadd.f32 1.0, %v3608_v33 }
 0x300   :  { %2133 = vperm.xlu1 %3513, %v3606_v57   ;;  %3625 = vrcp.f32 %v1880_v52  ;;  %v3612_v3 = vpop.eup %3611  ;;  %v3124_v57 = vmul.f32 -1.442695, %v1934_v16  ;;  %v3125_v56 = vmul.f32 -1.442695, %v1935_v26 }
 0x301   :  { %3627 = vpow2.f32 %v3121_v43  ;;  %v2592_v42 = vadd.f32 1.0, %v3612_v3 }
 0x302   :  { %3629 = vpow2.f32 %v4420_v58 }
 0x303   :  { %3631 = vrcp.f32 %v2591_v48 }
 0x304   :  { %2138 = vperm.xlu1 %3513, %v3610_v36   ;;  %v3614_v20 = vpop.eup %3613  ;;  %3633 = vpow2.f32 %v3122_v63  ;;  %v1936_v36 = vadd.f32 %v1920_v28, %v4202_v35 }
 0x305   :  { %v3616_v55 = vpop.eup %3615  ;;  %3635 = vpow2.f32 %v4429_v11 }
 0x306   :  { %v3618_v5 = vpop.eup %3617  ;;  %v1993_v9 = vadd.f32 1.0, %v3616_v55  ;;  %3637 = vrcp.f32 %v2592_v42  ;;  %v3126_v3 = vmul.f32 -1.442695, %v1936_v36 }
 0x307   :  { %v3620_v32 = vpop.eup %3619  ;;  %v2594_v40 = vadd.f32 1.0, %v3618_v5  ;;  %3639 = vpow2.f32 %v3123_v7 }
 0x308   :  { %2148 = vperm.xlu1 %3513, %v3614_v20   ;;  %v3622_v17 = vpop.eup %3621  ;;  %3641 = vrcp.f32 %v1993_v9 }
 0x309   :  { %v3624_v24 = vpop.eup %3623  ;;  %v1994_v6 = vadd.f32 1.0, %v3622_v17  ;;  %3643 = vpow2.f32 %v4438_v61 }
 0x30a   :  { %v3626_v58 = vpop.eup %3625  ;;  %3645 = vrcp.f32 %v2594_v40  ;;  %v2596_v11 = vadd.f32 1.0, %v3624_v24 }
 0x30b   :  { %v3628_v8 = vpop.eup %3627  ;;  %3647 = vpow2.f32 %v3124_v57 }
 0x30c   :  { %2158 = vperm.xlu1 %3513, %v3620_v32   ;;  %v3630_v52 = vpop.eup %3629  ;;  %3649 = vrcp.f32 %v1994_v6  ;;  %v1995_v43 = vadd.f32 1.0, %v3628_v8 }
 0x30d   :  { %v3632_v33 = vpop.eup %3631  ;;  %3651 = vrcp.f32 %v2596_v11  ;;  %v2598_v48 = vadd.f32 1.0, %v3630_v52 }
 0x30e   :  { %v3634_v44 = vpop.eup %3633  ;;  %3653 = vpow2.f32 %v3125_v56 }
 0x30f   :  { %v3636_v34 = vpop.eup %3635  ;;  %3655 = vrcp.f32 %v1995_v43  ;;  %v1996_v49 = vadd.f32 1.0, %v3634_v44 }
 0x310   :  { %2168 = vperm.xlu1 %3513, %v3626_v58   ;;  %v3638_v62 = vpop.eup %3637  ;;  %3657 = vrcp.f32 %v2598_v48  ;;  %v2600_v63 = vadd.f32 1.0, %v3636_v34 }
 0x311   :  { %v3640_v61 = vpop.eup %3639  ;;  %3659 = vpow2.f32 %v3126_v3 }
 0x312   :  { %v3642_v20 = vpop.eup %3641  ;;  %3661 = vrcp.f32 %v1996_v49  ;;  %v1997_v42 = vadd.f32 1.0, %v3640_v61 }
 0x313   :  { %v3644_v0 = vpop.eup %3643  ;;  %3663 = vrcp.f32 %v2600_v63 }
 0x314   :  { %2658 = vperm.xlu1 %3513, %v3632_v33   ;;  %v3646_v55 = vpop.eup %3645  ;;  %v2604_v7 = vadd.f32 1.0, %v3644_v0  ;;  %3665 = vrcp.f32 %v1997_v42 }
 0x315   :  { %v3648_v5 = vpop.eup %3647 }
 0x316   :  { %v3650_v32 = vpop.eup %3649  ;;  %v1998_v16 = vadd.f32 1.0, %v3648_v5  ;;  %3667 = vrcp.f32 %v2604_v7 }
 0x317   :  { %v3652_v9 = vpop.eup %3651 }
 0x318   :  { %2663 = vperm.xlu1 %3513, %v3638_v62   ;;  %v3654_v23 = vpop.eup %3653  ;;  %3669 = vrcp.f32 %v1998_v16 }
 0x319   :  { %v3656_v17 = vpop.eup %3655  ;;  %v1999_v24 = vadd.f32 1.0, %v3654_v23 }
 0x31a   :  { %v3658_v40 = vpop.eup %3657 }
 0x31b   :  { %v3660_v58 = vpop.eup %3659  ;;  %3671 = vrcp.f32 %v1999_v24 }
 0x31c   :  { %2673 = vperm.xlu1 %3513, %v3646_v55   ;;  %v3662_v57 = vpop.eup %3661  ;;  %v2000_v28 = vadd.f32 1.0, %v3660_v58 }
 0x31d   :  { %2322 = vxpose.xlu0.b32.start [1/8] (short) (narrow) %v3642_v20, 8  ;;  %v3664_v26 = vpop.eup %3663 }
 0x31e   :  { %v3666_v6 = vpop.eup %3665  ;;  %3673 = vrcp.f32 %v2000_v28 }
 0x31f   :  { %3675 = vpow2.f32 %v4363_v4 }
 0x320   :  { %2683 = vperm.xlu1 %3513, %v3652_v9   ;;  %v3668_v8 = vpop.eup %3667  ;;  %3677 = vpow2.f32 %v4378_v21  ;;  %v4482_v21 = vstv %s1765_s25 }
 0x321   :  { %2323 = vxpose.xlu0.b32.cont [2/8] (short) (narrow) %v3650_v32, 8  ;;  %3679 = vpow2.f32 %v4396_v51  ;;  %v4484_v51 = vld [vmem:[#allocation4] ss:$0 sm:$0xff] }
 0x322   :  { %v3670_v11 = vpop.eup %3669  ;;  %3681 = vpow2.f32 %v4424_v15 }
 0x323   :  { %3683 = vpow2.f32 %v4407_v22 }
 0x324   :  { %2693 = vperm.xlu1 %3513, %v3658_v40  }
 0x325   :  { %2324 = vxpose.xlu0.b32.cont [3/8] (short) (narrow) %v3656_v17, 8  ;;  %v3672_v52 = vpop.eup %3671 }
 0x328   :  { %2703 = vperm.xlu1 %3513, %v3664_v26   ;;  %v3674_v33 = vpop.eup %3673 }
 0x329   :  { %2325 = vxpose.xlu0.b32.cont [4/8] (short) (narrow) %v3662_v57, 8  ;;  %v3676_v56 = vpop.eup %3675 }
 0x32a   :  { %v2593_v36 = vadd.f32 1.0, %v3676_v56  ;;  %v3678_v43 = vpop.eup %3677 }
 0x32b   :  { %v2595_v44 = vadd.f32 1.0, %v3678_v43  ;;  %v3680_v48 = vpop.eup %3679 }
 0x32c   :  { %2723 = vperm.xlu1 %3513, %v3668_v8   ;;  %3685 = vrcp.f32 %v2593_v36  ;;  %v2597_v34 = vadd.f32 1.0, %v3680_v48  ;;  %v3682_v4 = vpop.eup %3681 }
 0x32d   :  { %2326 = vxpose.xlu0.b32.cont [5/8] (short) (narrow) %v3666_v6, 8  ;;  %3687 = vpow2.f32 %v4435_v39  ;;  %v2599_v62 = vadd.f32 1.0, %v3682_v4  ;;  %v3684_v3 = vpop.eup %3683 }
 0x32e   :  { %3689 = vrcp.f32 %v2595_v44 }
 0x32f   :  { %3691 = vpow2.f32 %v4411_v30  ;;  %v2601_v30 = vadd.f32 1.0, %v3684_v3 }
 0x330   :  { %3693 = vrcp.f32 %v2597_v34 }
 0x331   :  { %2327 = vxpose.xlu0.b32.cont [6/8] (short) (narrow) %v3670_v11, 8  ;;  %3695 = vpow2.f32 %v4417_v50 }
 0x332   :  { %3697 = vrcp.f32 %v2599_v62 }
 0x333   :  { %3699 = vrcp.f32 %v2601_v30 }
 0x335   :  { %2328 = vxpose.xlu0.b32.cont [7/8] (short) (narrow) %v3672_v52, 8 }
 0x336   :  { %v3686_v61 = vpop.eup %3685 }
 0x337   :  { %v3688_v63 = vpop.eup %3687 }
 0x338   :  { %v3690_v42 = vpop.eup %3689  ;;  %v2602_v16 = vadd.f32 1.0, %v3688_v63 }
 0x339   :  { %2329 = vxpose.xlu0.b32.end [8/8] (short) (narrow) %v3674_v33, 8  ;;  %v3692_v23 = vpop.eup %3691 }
 0x33a   :  { %v3694_v40 = vpop.eup %3693  ;;  %v2603_v26 = vadd.f32 1.0, %v3692_v23 }
 0x33b   :  { %v3696_v28 = vpop.eup %3695 }
 0x33c   :  { %v3698_v11 = vpop.eup %3697  ;;  %v2605_v36 = vadd.f32 1.0, %v3696_v28 }
 0x33d   :  { %v3700_v48 = vpop.eup %3699 }
 0x360   :  { %v2099_v15 = vpop.permute.xlu0 %2098 }
 0x361   :  { %v2178_v22 = vmul.f32 %v4484_v51, %v2099_v15 }
 0x362   :  { %v2094_v49 = vpop.permute.xlu1 %2093  ;;  %2668 = vperm.xlu0 %3514, %v3686_v61  }
 0x363   :  { %v2177_v39 = vmul.f32 %v4484_v51, %v2094_v49  ;;  %v2195_v20 = vmul.f32 %v4482_v21, %v2178_v22 }
 0x365   :  { %v2194_v0 = vmul.f32 %v4482_v21, %v2177_v39  ;;  %v2211_v55 = vadd.f32 %v2195_v20, %v4338_v45 }
 0x366   :  { %v2104_v5 = vpop.permute.xlu1 %2103  ;;  %2678 = vperm.xlu0 %3514, %v3690_v42  }
 0x367   :  { %v2210_v7 = vadd.f32 %v2194_v0, %v4338_v45  ;;  %v3137_v32 = vmul.f32 -1.442695, %v2211_v55  ;;  %v2179_v9 = vmul.f32 %v4484_v51, %v2104_v5 }
 0x369   :  { %v3136_v17 = vmul.f32 -1.442695, %v2210_v7  ;;  %3701 = vpow2.f32 %v3137_v32  ;;  %v2196_v50 = vmul.f32 %v4482_v21, %v2179_v9 }
 0x36a   :  { %v2109_v24 = vpop.permute.xlu1 %2108  ;;  %2688 = vperm.xlu0 %3514, %v3694_v40  }
 0x36b   :  { %3703 = vpow2.f32 %v3136_v17  ;;  %v2212_v58 = vadd.f32 %v2196_v50, %v4338_v45  ;;  %v2180_v57 = vmul.f32 %v4484_v51, %v2109_v24 }
 0x36c   :  { %3705 = vrcp.f32 %v2602_v16 }
 0x36d   :  { %v3138_v6 = vmul.f32 -1.442695, %v2212_v58  ;;  %v2197_v8 = vmul.f32 %v4482_v21, %v2180_v57 }
 0x36e   :  { %v2114_v52 = vpop.permute.xlu1 %2113  ;;  %2698 = vperm.xlu0 %3514, %v3698_v11  }
 0x36f   :  { %3707 = vpow2.f32 %v3138_v6  ;;  %v2213_v33 = vadd.f32 %v2197_v8, %v4338_v45  ;;  %v2181_v56 = vmul.f32 %v4484_v51, %v2114_v52 }
 0x370   :  { %3709 = vrcp.f32 %v2603_v26 }
 0x371   :  { %v3139_v43 = vmul.f32 -1.442695, %v2213_v33  ;;  %v2198_v44 = vmul.f32 %v4482_v21, %v2181_v56 }
 0x372   :  { %v2119_v34 = vpop.permute.xlu1 %2118  ;;  %2708 = vperm.xlu0 %3514, %v3700_v48  }
 0x373   :  { %v3702_v4 = vpop.eup %3701  ;;  %3711 = vpow2.f32 %v3139_v43  ;;  %v2214_v15 = vadd.f32 %v2198_v44, %v4338_v45  ;;  %v2182_v62 = vmul.f32 %v4484_v51, %v2119_v34 }
 0x374   :  { %v2275_v3 = vadd.f32 1.0, %v3702_v4  ;;  %3713 = vrcp.f32 %v2605_v36 }
 0x375   :  { %v3704_v22 = vpop.eup %3703  ;;  %v3140_v61 = vmul.f32 -1.442695, %v2214_v15  ;;  %v2199_v49 = vmul.f32 %v4482_v21, %v2182_v62 }
 0x376   :  { %v3706_v39 = vpop.eup %3705  ;;  %v2274_v20 = vadd.f32 1.0, %v3704_v22  ;;  %3715 = vrcp.f32 %v2275_v3  ;;  %v2124_v30 = vpop.permute.xlu1 %2123 }
 0x377   :  { %3717 = vpow2.f32 %v3140_v61  ;;  %v2215_v63 = vadd.f32 %v2199_v49, %v4338_v45  ;;  %2713 = vperm.xlu0 %3514, %v3706_v39   ;;  %v2144_v0 = vpop.permute.xlu0 %2143  ;;  %v2183_v55 = vmul.f32 %v4484_v51, %v2124_v30 }
 0x378   :  { %3719 = vrcp.f32 %v2274_v20  ;;  %v2187_v17 = vmul.f32 %v4484_v51, %v2144_v0 }
 0x379   :  { %v3708_v42 = vpop.eup %3707  ;;  %v3141_v5 = vmul.f32 -1.442695, %v2215_v63  ;;  %v2200_v7 = vmul.f32 %v4482_v21, %v2183_v55 }
 0x37a   :  { %v3710_v32 = vpop.eup %3709  ;;  %v2276_v9 = vadd.f32 1.0, %v3708_v42  ;;  %v2204_v8 = vmul.f32 %v4482_v21, %v2187_v17 }
 0x37b   :  { %3721 = vpow2.f32 %v3141_v5  ;;  %v2216_v16 = vadd.f32 %v2200_v7, %v4338_v45  ;;  %2718 = vperm.xlu0 %3514, %v3710_v32   ;;  %v2154_v40 = vpop.permute.xlu0 %2153  ;;  %v2129_v57 = vpop.permute.xlu1 %2128 }
 0x37c   :  { %3723 = vrcp.f32 %v2276_v9  ;;  %v2184_v26 = vmul.f32 %v4484_v51, %v2129_v57  ;;  %v2189_v11 = vmul.f32 %v4484_v51, %v2154_v40  ;;  %v2220_v15 = vadd.f32 %v2204_v8, %v4338_v45 }
 0x37d   :  { %v3712_v23 = vpop.eup %3711  ;;  %v3142_v50 = vmul.f32 -1.442695, %v2216_v16 }
 0x37e   :  { %v3714_v24 = vpop.eup %3713  ;;  %v2277_v58 = vadd.f32 1.0, %v3712_v23  ;;  %v2201_v52 = vmul.f32 %v4482_v21, %v2184_v26  ;;  %v2206_v62 = vmul.f32 %v4482_v21, %v2189_v11  ;;  %v3146_v0 = vmul.f32 -1.442695, %v2220_v15 }
 0x37f   :  { %2728 = vperm.xlu0 %3514, %v3714_v24   ;;  %v2134_v36 = vpop.permute.xlu1 %2133  ;;  %v2164_v44 = vpop.permute.xlu0 %2163 }
 0x380   :  { %v3716_v28 = vpop.eup %3715  ;;  %3725 = vrcp.f32 %v2277_v58  ;;  %v2217_v43 = vadd.f32 %v2201_v52, %v4338_v45  ;;  %v2185_v48 = vmul.f32 %v4484_v51, %v2134_v36  ;;  %v2191_v49 = vmul.f32 %v4484_v51, %v2164_v44 }
 0x381   :  { %v3718_v6 = vpop.eup %3717  ;;  %3727 = vpow2.f32 %v3142_v50  ;;  %v2222_v55 = vadd.f32 %v2206_v62, %v4338_v45 }
 0x382   :  { %v3720_v33 = vpop.eup %3719  ;;  %v2278_v56 = vadd.f32 1.0, %v3718_v6  ;;  %v3143_v3 = vmul.f32 -1.442695, %v2217_v43  ;;  %v2202_v22 = vmul.f32 %v4482_v21, %v2185_v48  ;;  %v2208_v32 = vmul.f32 %v4482_v21, %v2191_v49 }
 0x383   :  { %v3451_v34 = vpack.c.bf16 %v3716_v28, %v3720_v33  ;;  %v2139_v39 = vpop.permute.xlu1 %2138  ;;  %v3148_v40 = vmul.f32 -1.442695, %v2222_v55  ;;  %v4537_v49 = vstv %s1766_s26 }
 0x384   :  { %3729 = vrcp.f32 %v2278_v56  ;;  %v2218_v20 = vadd.f32 %v2202_v22, %v4338_v45  ;;  %v2186_v30 = vmul.f32 %v4484_v51, %v2139_v39  ;;  %v2224_v26 = vadd.f32 %v2208_v32, %v4338_v45 }
 0x385   :  { %v3722_v4 = vpop.eup %3721  ;;  %3452 = vmatpush3.bf16.msra.mxu0 %v3451_v34  ;;  %3731 = vpow2.f32 %v3143_v3 }
 0x386   :  { %v2279_v61 = vadd.f32 1.0, %v3722_v4  ;;  %3453 = vmatprep.subr.bf16.mxu0 %v3893_v13  ;;  %v3724_v63 = vpop.eup %3723  ;;  %v3144_v42 = vmul.f32 -1.442695, %v2218_v20  ;;  %v2203_v5 = vmul.f32 %v4482_v21, %v2186_v30  ;;  %v3150_v44 = vmul.f32 -1.442695, %v2224_v26 }
 0x387   :  { %v2149_v9 = vpop.permute.xlu1 %2148 }
 0x388   :  { %3733 = vrcp.f32 %v2279_v61  ;;  %v2219_v23 = vadd.f32 %v2203_v5, %v4338_v45  ;;  %v2188_v17 = vmul.f32 %v4484_v51, %v2149_v9 }
 0x389   :  { %3735 = vpow2.f32 %v3144_v42 }
 0x38a   :  { %v3726_v7 = vpop.eup %3725  ;;  %3737 = vpow2.f32 %v3146_v0  ;;  %v3145_v24 = vmul.f32 -1.442695, %v2219_v23  ;;  %v2205_v58 = vmul.f32 %v4482_v21, %v2188_v17 }
 0x38b   :  { %v3728_v16 = vpop.eup %3727  ;;  %v3454_v50 = vpack.c.bf16 %v3726_v7, %v3724_v63  ;;  %v2159_v28 = vpop.permute.xlu1 %2158 }
 0x38c   :  { %v2280_v57 = vadd.f32 1.0, %v3728_v16  ;;  %3739 = vpow2.f32 %v3145_v24  ;;  %v2221_v6 = vadd.f32 %v2205_v58, %v4338_v45  ;;  %v2190_v8 = vmul.f32 %v4484_v51, %v2159_v28 }
 0x38d   :  { %3455 = vmatpush3.bf16.msra.mxu0 %v3454_v50  ;;  %3741 = vpow2.f32 %v3148_v40 }
 0x38e   :  { %3456 = vmatprep.subr.bf16.mxu0 %v3893_v13  ;;  %v3730_v11 = vpop.eup %3729  ;;  %v3147_v33 = vmul.f32 -1.442695, %v2221_v6  ;;  %v2207_v56 = vmul.f32 %v4482_v21, %v2190_v8  ;;  %3743 = vrcp.f32 %v2280_v57 }
 0x38f   :  { %v3732_v52 = vpop.eup %3731  ;;  %v2169_v48 = vpop.permute.xlu1 %2168 }
 0x390   :  { %v2281_v43 = vadd.f32 1.0, %v3732_v52  ;;  %3745 = vpow2.f32 %v3147_v33  ;;  %v2223_v34 = vadd.f32 %v2207_v56, %v4338_v45  ;;  %v2192_v4 = vmul.f32 %v4484_v51, %v2169_v48 }
 0x392   :  { %v3734_v36 = vpop.eup %3733  ;;  %3747 = vrcp.f32 %v2281_v43  ;;  %v3149_v3 = vmul.f32 -1.442695, %v2223_v34  ;;  %v2209_v22 = vmul.f32 %v4482_v21, %v2192_v4 }
 0x393   :  { %v3457_v15 = vpack.c.bf16 %v3734_v36, %v3730_v11  ;;  %v3736_v62 = vpop.eup %3735  ;;  %3749 = vpow2.f32 %v3150_v44  ;;  %v2659_v39 = vpop.permute.xlu1 %2658 }
 0x394   :  { %v2282_v61 = vadd.f32 1.0, %v3736_v62  ;;  %v3738_v20 = vpop.eup %3737  ;;  %3751 = vpow2.f32 %v3149_v3  ;;  %v2225_v30 = vadd.f32 %v2209_v22, %v4338_v45  ;;  %v2742_v63 = vmul.f32 %v4484_v51, %v2659_v39 }
 0x395   :  { %3458 = vmatpush3.bf16.msra.mxu0 %v3457_v15  ;;  %v2284_v5 = vadd.f32 1.0, %v3738_v20 }
 0x396   :  { %3459 = vmatprep.subr.bf16.mxu0 %v3893_v13  ;;  %v3740_v0 = vpop.eup %3739  ;;  %v3151_v55 = vmul.f32 -1.442695, %v2225_v30  ;;  %v2759_v42 = vmul.f32 %v4537_v49, %v2742_v63  ;;  %3753 = vrcp.f32 %v2282_v61 }
 0x397   :  { %v2283_v21 = vadd.f32 1.0, %v3740_v0  ;;  %v2664_v7 = vpop.permute.xlu1 %2663  ;;  %v3742_v32 = vpop.eup %3741 }
 0x398   :  { %3755 = vpow2.f32 %v3151_v55  ;;  %v2775_v9 = vadd.f32 %v2759_v42, %v4202_v35  ;;  %v2743_v16 = vmul.f32 %v4484_v51, %v2664_v7  ;;  %v3744_v23 = vpop.eup %3743  ;;  %v2286_v58 = vadd.f32 1.0, %v3742_v32 }
 0x399   :  { %3757 = vrcp.f32 %v2283_v21 }
 0x39a   :  { %v3746_v17 = vpop.eup %3745  ;;  %v3169_v50 = vmul.f32 -1.442695, %v2775_v9  ;;  %v2760_v40 = vmul.f32 %v4537_v49, %v2743_v16  ;;  %3759 = vrcp.f32 %v2284_v5 }
 0x39b   :  { %v2285_v57 = vadd.f32 1.0, %v3746_v17  ;;  %v2674_v32 = vpop.permute.xlu1 %2673 }
 0x39c   :  { %v3748_v24 = vpop.eup %3747  ;;  %3761 = vpow2.f32 %v3169_v50  ;;  %v2776_v26 = vadd.f32 %v2760_v40, %v4202_v35  ;;  %v2745_v16 = vmul.f32 %v4484_v51, %v2674_v32 }
 0x39d   :  { %v3460_v28 = vpack.c.bf16 %v3748_v24, %v3744_v23  ;;  %v3750_v6 = vpop.eup %3749  ;;  %3763 = vrcp.f32 %v2285_v57  ;;  %v2338_v42 = vpop.trf.xlu0 }
 0x39e   :  { %v3752_v8 = vpop.eup %3751  ;;  %v3170_v11 = vmul.f32 -1.442695, %v2776_v26  ;;  %3765 = vrcp.f32 %v2286_v58  ;;  %v2288_v33 = vadd.f32 1.0, %v3750_v6  ;;  %v2762_v17 = vmul.f32 %v4537_v49, %v2745_v16 }
 0x39f   :  { %3461 = vmatpush3.bf16.msra.mxu0 %v3460_v28  ;;  %v2287_v52 = vadd.f32 1.0, %v3752_v8  ;;  %v2684_v9 = vpop.permute.xlu1 %2683 }
 0x3a0   :  { %3462 = vmatprep.subr.bf16.mxu0 %v3893_v13  ;;  %3767 = vpow2.f32 %v3170_v11  ;;  %v3754_v56 = vpop.eup %3753  ;;  %v2747_v50 = vmul.f32 %v4484_v51, %v2684_v9  ;;  %v2778_v24 = vadd.f32 %v2762_v17, %v4202_v35 }
 0x3a1   :  { %3769 = vrcp.f32 %v2287_v52 }
 0x3a2   :  { %v3756_v36 = vpop.eup %3755  ;;  %3771 = vrcp.f32 %v2288_v33  ;;  %v2764_v58 = vmul.f32 %v4537_v49, %v2747_v50  ;;  %v3172_v28 = vmul.f32 -1.442695, %v2778_v24 }
 0x3a3   :  { %v3758_v43 = vpop.eup %3757  ;;  %v2289_v44 = vadd.f32 1.0, %v3756_v36  ;;  %v2694_v23 = vpop.permute.xlu1 %2693 }
 0x3a4   :  { %v3463_v48 = vpack.c.bf16 %v3758_v43, %v3754_v56  ;;  %v3760_v34 = vpop.eup %3759  ;;  %v2749_v40 = vmul.f32 %v4484_v51, %v2694_v23  ;;  %v2780_v6 = vadd.f32 %v2764_v58, %v4202_v35 }
 0x3a5   :  { %3773 = vrcp.f32 %v2289_v44 }
 0x3a6   :  { %v3762_v4 = vpop.eup %3761  ;;  %3464 = vmatpush3.bf16.msra.mxu0 %v3463_v48  ;;  %v2766_v26 = vmul.f32 %v4537_v49, %v2749_v40  ;;  %v3174_v56 = vmul.f32 -1.442695, %v2780_v6 }
 0x3a7   :  { %v3764_v15 = vpop.eup %3763  ;;  %3465 = vmatprep.subr.bf16.mxu0 %v3893_v13  ;;  %v2839_v62 = vadd.f32 1.0, %v3762_v4  ;;  %v2704_v57 = vpop.permute.xlu1 %2703 }
 0x3a8   :  { %v3466_v3 = vpack.c.bf16 %v3764_v15, %v3760_v34  ;;  %v3766_v22 = vpop.eup %3765  ;;  %v2751_v8 = vmul.f32 %v4484_v51, %v2704_v57  ;;  %v2782_v33 = vadd.f32 %v2766_v26, %v4202_v35 }
 0x3a9   :  { %3775 = vrcp.f32 %v2839_v62 }
 0x3aa   :  { %v3768_v61 = vpop.eup %3767  ;;  %3467 = vmatpush3.bf16.msra.mxu0 %v3466_v3  ;;  %v2768_v36 = vmul.f32 %v4537_v49, %v2751_v8  ;;  %v3176_v4 = vmul.f32 -1.442695, %v2782_v33 }
 0x3ab   :  { %v3770_v39 = vpop.eup %3769  ;;  %v2840_v20 = vadd.f32 1.0, %v3768_v61  ;;  %3468 = vmatprep.subr.bf16.mxu0 %v3893_v13 }
 0x3ac   :  { %v3469_v30 = vpack.c.bf16 %v3770_v39, %v3766_v22  ;;  %v3772_v63 = vpop.eup %3771  ;;  %v2784_v15 = vadd.f32 %v2768_v36, %v4202_v35  ;;  %v2724_v22 = vpop.permute.xlu1 %2723 }
 0x3ad   :  { %3777 = vrcp.f32 %v2840_v20 }
 0x3ae   :  { %3470 = vmatpush3.bf16.msra.mxu0 %v3469_v30  ;;  %3779 = vpow2.f32 %v3172_v28  ;;  %v3178_v30 = vmul.f32 -1.442695, %v2784_v15 }
 0x3af   :  { %v3774_v0 = vpop.eup %3773  ;;  %3471 = vmatprep.subr.bf16.mxu0 %v3893_v13  ;;  %3781 = vpow2.f32 %v3174_v56 }
 0x3b0   :  { %v3472_v55 = vpack.c.bf16 %v3774_v0, %v3772_v63  ;;  %v2755_v63 = vmul.f32 %v4484_v51, %v2724_v22 }
 0x3b2   :  { %3473 = vmatpush3.bf16.msra.mxu0 %v3472_v55  ;;  %v2772_v32 = vmul.f32 %v4537_v49, %v2755_v63 }
 0x3b3   :  { %v3776_v5 = vpop.eup %3775 }
 0x3b4   :  { %v2788_v57 = vadd.f32 %v2772_v32, %v4202_v35 }
 0x3b5   :  { %3389 = vmatmul.mubr.f32.vlgmr.msra.gmra.mrb[16].mxu0 %v2338_v42 }
 0x3b7   :  { %v3778_v21 = vpop.eup %3777 }
 0x3b8   :  { %v3475_v7 = vpack.c.bf16 %v3778_v21, %v3776_v5  ;;  %v3780_v5 = vpop.eup %3779 }
 0x3b9   :  { %v2842_v23 = vadd.f32 1.0, %v3780_v5  ;;  %v3782_v50 = vpop.eup %3781 }
 0x3ba   :  { %3476 = vmatpush3.bf16.msra.mxu1 %v3475_v7  ;;  %v2844_v8 = vadd.f32 1.0, %v3782_v50 }
 0x3bb   :  { %3477 = vmatprep.subr.bf16.mxu1 %v3893_v13 }
 0x3e1   :  { %v2669_v11 = vpop.permute.xlu0 %2668 }
 0x3e2   :  { %v2744_v52 = vmul.f32 %v4484_v51, %v2669_v11 }
 0x3e4   :  { %v2761_v43 = vmul.f32 %v4537_v49, %v2744_v52 }
 0x3e5   :  { %v2679_v44 = vpop.permute.xlu0 %2678 }
 0x3e6   :  { %v2777_v48 = vadd.f32 %v2761_v43, %v4202_v35  ;;  %v2746_v34 = vmul.f32 %v4484_v51, %v2679_v44  ;;  %v3182_v43 = vmul.f32 -1.442695, %v2788_v57 }
 0x3e8   :  { %v3171_v62 = vmul.f32 -1.442695, %v2777_v48  ;;  %v2763_v3 = vmul.f32 %v4537_v49, %v2746_v34 }
 0x3e9   :  { %v2689_v61 = vpop.permute.xlu0 %2688 }
 0x3ea   :  { %3783 = vpow2.f32 %v3171_v62  ;;  %v2779_v39 = vadd.f32 %v2763_v3, %v4202_v35  ;;  %v2748_v20 = vmul.f32 %v4484_v51, %v2689_v61 }
 0x3eb   :  { %3785 = vpow2.f32 %v3176_v4 }
 0x3ec   :  { %v3173_v0 = vmul.f32 -1.442695, %v2779_v39  ;;  %v2765_v55 = vmul.f32 %v4537_v49, %v2748_v20 }
 0x3ed   :  { %v2699_v42 = vpop.permute.xlu0 %2698 }
 0x3ee   :  { %3787 = vpow2.f32 %v3173_v0  ;;  %v2781_v21 = vadd.f32 %v2765_v55, %v4202_v35  ;;  %v2750_v7 = vmul.f32 %v4484_v51, %v2699_v42 }
 0x3ef   :  { %3789 = vpow2.f32 %v3178_v30 }
 0x3f0   :  { %v3175_v9 = vmul.f32 -1.442695, %v2781_v21  ;;  %v2767_v16 = vmul.f32 %v4537_v49, %v2750_v7 }
 0x3f1   :  { %v2709_v17 = vpop.permute.xlu0 %2708 }
 0x3f2   :  { %3791 = vpow2.f32 %v3175_v9  ;;  %v2783_v40 = vadd.f32 %v2767_v16, %v4202_v35  ;;  %v2752_v24 = vmul.f32 %v4484_v51, %v2709_v17 }
 0x3f3   :  { %3793 = vrcp.f32 %v2842_v23 }
 0x3f4   :  { %v3784_v58 = vpop.eup %3783  ;;  %v3177_v26 = vmul.f32 -1.442695, %v2783_v40  ;;  %v2769_v28 = vmul.f32 %v4537_v49, %v2752_v24 }
 0x3f5   :  { %v3786_v6 = vpop.eup %3785  ;;  %v2841_v11 = vadd.f32 1.0, %v3784_v58 }
 0x3f6   :  { %v2714_v52 = vpop.permute.xlu0 %2713  ;;  %3795 = vpow2.f32 %v3177_v26  ;;  %v2785_v33 = vadd.f32 %v2769_v28, %v4202_v35  ;;  %v2846_v34 = vadd.f32 1.0, %v3786_v6 }
 0x3f7   :  { %v2753_v56 = vmul.f32 %v4484_v51, %v2714_v52  ;;  %3797 = vrcp.f32 %v2841_v11 }
 0x3f8   :  { %v3788_v36 = vpop.eup %3787  ;;  %v3179_v44 = vmul.f32 -1.442695, %v2785_v33  ;;  %3799 = vrcp.f32 %v2844_v8 }
 0x3f9   :  { %v2770_v48 = vmul.f32 %v4537_v49, %v2753_v56  ;;  %v2843_v4 = vadd.f32 1.0, %v3788_v36  ;;  %v3790_v62 = vpop.eup %3789 }
 0x3fa   :  { %v2719_v15 = vpop.permute.xlu0 %2718  ;;  %3801 = vpow2.f32 %v3179_v44  ;;  %v2848_v30 = vadd.f32 1.0, %v3790_v62 }
 0x3fb   :  { %v2786_v3 = vadd.f32 %v2770_v48, %v4202_v35  ;;  %v2754_v22 = vmul.f32 %v4484_v51, %v2719_v15  ;;  %3803 = vrcp.f32 %v2843_v4 }
 0x3fc   :  { %v3792_v61 = vpop.eup %3791  ;;  %3805 = vpow2.f32 %v3182_v43 }
 0x3fd   :  { %v3180_v39 = vmul.f32 -1.442695, %v2786_v3  ;;  %v2771_v20 = vmul.f32 %v4537_v49, %v2754_v22  ;;  %3807 = vrcp.f32 %v2846_v34  ;;  %v2845_v63 = vadd.f32 1.0, %v3792_v61  ;;  %v3794_v55 = vpop.eup %3793 }
 0x3ff   :  { %3809 = vpow2.f32 %v3180_v39  ;;  %v2787_v0 = vadd.f32 %v2771_v20, %v4202_v35 }
 0x400   :  { %3811 = vrcp.f32 %v2845_v63  ;;  %v3796_v42 = vpop.eup %3795 }
 0x401   :  { %v3181_v5 = vmul.f32 -1.442695, %v2787_v0  ;;  %v3798_v21 = vpop.eup %3797  ;;  %3813 = vrcp.f32 %v2848_v30  ;;  %v2847_v7 = vadd.f32 1.0, %v3796_v42 }
 0x402   :  { %v3478_v32 = vpack.c.bf16 %v3794_v55, %v3798_v21  ;;  %v3800_v9 = vpop.eup %3799  ;;  %v4616_v21 = vld [vmem:[#allocation3] sm:$0x1] }
 0x403   :  { %3815 = vpow2.f32 %v3181_v5 }
 0x404   :  { %3817 = vrcp.f32 %v2847_v7  ;;  %v3802_v16 = vpop.eup %3801  ;;  %3479 = vmatpush3.bf16.msra.mxu1 %v3478_v32 }
 0x405   :  { %v3804_v23 = vpop.eup %3803  ;;  %3480 = vmatprep.subr.bf16.mxu1 %v3893_v13  ;;  %v2849_v50 = vadd.f32 1.0, %v3802_v16 }
 0x406   :  { %v3806_v17 = vpop.eup %3805  ;;  %v3481_v40 = vpack.c.bf16 %v3800_v9, %v3804_v23  ;;  %v2729_v23 = vpop.permute.xlu0 %2728 }
 0x407   :  { %v3808_v24 = vpop.eup %3807  ;;  %v2852_v28 = vadd.f32 1.0, %v3806_v17  ;;  %3819 = vrcp.f32 %v2849_v50 }
 0x408   :  { %3482 = vmatpush3.bf16.msra.mxu1 %v3481_v40 }
 0x409   :  { %v3810_v58 = vpop.eup %3809  ;;  %3483 = vmatprep.subr.bf16.mxu1 %v3893_v13 }
 0x40a   :  { %v3812_v57 = vpop.eup %3811  ;;  %v2850_v26 = vadd.f32 1.0, %v3810_v58 }
 0x40b   :  { %v3484_v6 = vpack.c.bf16 %v3808_v24, %v3812_v57  ;;  %v3814_v8 = vpop.eup %3813 }
 0x40c   :  { %3821 = vrcp.f32 %v2850_v26 }
 0x40d   :  { %v3816_v11 = vpop.eup %3815  ;;  %3485 = vmatpush3.bf16.msra.mxu1 %v3484_v6  ;;  %3823 = vrcp.f32 %v2852_v28 }
 0x40e   :  { %v3818_v52 = vpop.eup %3817  ;;  %v2851_v33 = vadd.f32 1.0, %v3816_v11  ;;  %3486 = vmatprep.subr.bf16.mxu1 %v3893_v13 }
 0x40f   :  { %v3487_v56 = vpack.c.bf16 %v3814_v8, %v3818_v52 }
 0x410   :  { %3825 = vrcp.f32 %v2851_v33 }
 0x411   :  { %3488 = vmatpush3.bf16.msra.mxu1 %v3487_v56  ;;  %v3820_v36 = vpop.eup %3819 }
 0x412   :  { %3489 = vmatprep.subr.bf16.mxu1 %v3893_v13 }
 0x416   :  { %v3822_v43 = vpop.eup %3821 }
 0x417   :  { %v3490_v44 = vpack.c.bf16 %v3822_v43, %v3820_v36  ;;  %v3824_v48 = vpop.eup %3823 }
 0x419   :  { %3491 = vmatpush3.bf16.msra.mxu1 %v3490_v44 }
 0x41a   :  { %v3826_v34 = vpop.eup %3825  ;;  %3492 = vmatprep.subr.bf16.mxu1 %v3893_v13 }
 0x41b   :  { %v3493_v4 = vpack.c.bf16 %v3824_v48, %v3826_v34  ;;  %v2756_v48 = vmul.f32 %v4484_v51, %v2729_v23 }
 0x41d   :  { %3494 = vmatpush3.bf16.msra.mxu1 %v3493_v4 }
 0x41e   :  { %3495 = vmatprep.subr.bf16.mxu1 %v3893_v13 }
 0x488   :  { %v2420_v15 = vpop.f32.mrb[16].mxu0 }
 0x489   :  { %v2424_v62 = vmul.f32 0.015625, %v2420_v15  ;;  %v3390_v3 = vpop.f32.mrb[17].mxu0  ;;  %v2773_v15 = vmul.f32 %v4537_v49, %v2756_v48 }
 0x48b   :  { %3827 = vtanh.f32 %v2424_v62 }
 0x495   :  { %v3828_v22 = vpop.eup %3827 }
 0x496   :  { %v2426_v61 = vsel %vm1616_vm10, %v3828_v22, 0.0  ;;  %v2789_v22 = vadd.f32 %v2773_v15, %v4202_v35 }
 0x497   :  { %v2430_v39 = vrot.slane %v2426_v61, %v1697_v31 }
 0x499   :  { %v2437_v20 = vmul.f32 %v4239_v53, %v2430_v39  ;;  %v2431_v30 = vmul.f32 %v4208_v38, %v2430_v39  ;;  %v2440_v63 = vmul.f32 %v4284_v14, %v2430_v39  ;;  %v2432_v13 = vmul.f32 %v4205_v37, %v2430_v39  ;;  %v3851_v37 = vld [vmem:[#allocation5 + $0x78] sm:$0xff] }
 0x49a   :  { %v2441_v0 = vmul.f32 %v4267_v1, %v2430_v39  ;;  %v2433_v29 = vmul.f32 %v4228_v47, %v2430_v39  ;;  %v2443_v27 = vmul.f32 %v4281_v10, %v2430_v39  ;;  %v2434_v31 = vmul.f32 %v4242_v54, %v2430_v39 }
 0x49b   :  { %2459 = vadd.xlane.f32.xlu0 %v2437_v20  ;;  %2447 = vadd.xlane.f32.xlu1 %v2431_v30  ;;  %v2445_v38 = vmul.f32 %v4294_v18, %v2430_v39  ;;  %v2435_v53 = vmul.f32 %v4225_v46, %v2430_v39  ;;  %v2526_v14 = vmul.f32 %v3851_v37, %v4328_v41  ;;  %v3183_v20 = vmul.f32 -1.442695, %v2789_v22 }
 0x49c   :  { %v2436_v1 = vmul.f32 %v4256_v60, %v2430_v39  ;;  %v2438_v10 = vmul.f32 %v4270_v2, %v2430_v39  ;;  %v2439_v55 = vmul.f32 %v4253_v59, %v2430_v39  ;;  %v2442_v46 = vmul.f32 %v4297_v19, %v2430_v39 }
 0x49d   :  { %v2542_v47 = vadd.f32 %v2526_v14, %v4338_v45  ;;  %v2444_v18 = vmul.f32 %v4307_v12, %v2430_v39  ;;  %v2446_v42 = vmul.f32 %v4315_v25, %v2430_v39  ;;  %v2991_v2 = vmul.f32 %v4616_v21, %v4328_v41 }
 0x49f   :  { %2465 = vadd.xlane.f32.xlu0 %v2440_v63  ;;  %2449 = vadd.xlane.f32.xlu1 %v2432_v13  ;;  %v3167_v54 = vmul.f32 -1.442695, %v2542_v47  ;;  %v2992_v59 = vadd.f32 %v2991_v2, %v4338_v45 }
 0x4a1   :  { %3829 = vpow2.f32 %v3167_v54  ;;  %v3185_v7 = vmul.f32 -1.442695, %v2992_v59 }
 0x4a3   :  { %2467 = vadd.xlane.f32.xlu0 %v2441_v0  ;;  %2451 = vadd.xlane.f32.xlu1 %v2433_v29 }
 0x4a7   :  { %2471 = vadd.xlane.f32.xlu0 %v2443_v27  ;;  %2453 = vadd.xlane.f32.xlu1 %v2434_v31 }
 0x4ab   :  { %2475 = vadd.xlane.f32.xlu0 %v2445_v38  ;;  %2455 = vadd.xlane.f32.xlu1 %v2435_v53  ;;  %v3830_v60 = vpop.eup %3829 }
 0x4ac   :  { %v2606_v5 = vadd.f32 1.0, %v3830_v60 }
 0x4ae   :  { %3831 = vrcp.f32 %v2606_v5 }
 0x4af   :  { %2457 = vadd.xlane.f32.xlu1 %v2436_v1  ;;  %3833 = vpow2.f32 %v3185_v7 }
 0x4b3   :  { %2461 = vadd.xlane.f32.xlu1 %v2438_v10 }
 0x4b7   :  { %2463 = vadd.xlane.f32.xlu1 %v2439_v55 }
 0x4b8   :  { %v3832_v32 = vpop.eup %3831 }
 0x4b9   :  { %v3834_v19 = vpop.eup %3833 }
 0x4ba   :  { %v2996_v12 = vadd.f32 1.0, %v3834_v19 }
 0x4bb   :  { %2469 = vadd.xlane.f32.xlu1 %v2442_v46 }
 0x4bc   :  { %3835 = vrcp.f32 %v2996_v12 }
 0x4bd   :  { %3837 = vpow2.f32 %v3183_v20 }
 0x4bf   :  { %2473 = vadd.xlane.f32.xlu1 %v2444_v18 }
 0x4c3   :  { %2477 = vadd.xlane.f32.xlu1 %v2446_v42 }
 0x4c6   :  { %v3836_v9 = vpop.eup %3835 }
 0x4c7   :  { %v2999_v25 = vmul.f32 %v4616_v21, %v3836_v9  ;;  %v3838_v37 = vpop.eup %3837 }
 0x4c8   :  { %v2853_v1 = vadd.f32 1.0, %v3838_v37 }
 0x4c9   :  { %v3001_v16 = vsel %vm3000_vm13, %v2999_v25, 0.0 }
 0x4d4   :  { %2733 = vperm.xlu1 %3513, %v3832_v32  }
 0x4f8   :  { %3002 = vadd.xlane.f32.xlu1 %v3001_v16 }
 0x528   :  { %v2460_v17 = vpop.xlane.xlu0 %2459  ;;  %v2448_v50 = vpop.xlane.xlu1 %2447 }
 0x529   :  { %2485 = vst.msk [vmem:[#allocation6 + $0x30] sm:$0xff] %vm1748_vm12, %v2460_v17  ;;  %2479 = vst.msk [vmem:[#allocation6] sm:$0xff] %vm1748_vm12, %v2448_v50 }
 0x52c   :  { %v2466_v41 = vpop.xlane.xlu0 %2465  ;;  %v2450_v45 = vpop.xlane.xlu1 %2449 }
 0x52d   :  { %2488 = vst.msk [vmem:[#allocation6 + $0x48] sm:$0xff] %vm1748_vm12, %v2466_v41  ;;  %2480 = vst.msk [vmem:[#allocation6 + $0x8] sm:$0xff] %vm1748_vm12, %v2450_v45  ;;  %v3017_v41 = vstv %s3036_s3 }
 0x530   :  { %v2468_v40 = vpop.xlane.xlu0 %2467  ;;  %v2452_v24 = vpop.xlane.xlu1 %2451  ;;  %v2639_v58 = vld [vmem:[#allocation6] sm:$0xff]  ;;  %v2645_v4 = vld [vmem:[#allocation6 + $0x30] sm:$0xff] }
 0x531   :  { %2489 = vst.msk [vmem:[#allocation6 + $0x50] sm:$0xff] %vm1748_vm12, %v2468_v40  ;;  %2481 = vst.msk [vmem:[#allocation6 + $0x10] sm:$0xff] %vm1748_vm12, %v2452_v24  ;;  %2887 = vxpose.xlu0.b32.start [1/16] (narrow) %v2639_v58, 8 }
 0x534   :  { %v2472_v57 = vpop.xlane.xlu0 %2471  ;;  %v2454_v26 = vpop.xlane.xlu1 %2453  ;;  %v2640_v28 = vld [vmem:[#allocation6 + $0x8] sm:$0xff] }
 0x535   :  { %2491 = vst.msk [vmem:[#allocation6 + $0x60] sm:$0xff] %vm1748_vm12, %v2472_v57  ;;  %2482 = vst.msk [vmem:[#allocation6 + $0x18] sm:$0xff] %vm1748_vm12, %v2454_v26  ;;  %2888 = vxpose.xlu0.b32.cont [2/16] (narrow) %v2640_v28, 8  ;;  %v2648_v63 = vld [vmem:[#allocation6 + $0x48] sm:$0xff] }
 0x538   :  { %v2476_v6 = vpop.xlane.xlu0 %2475  ;;  %v2456_v8 = vpop.xlane.xlu1 %2455  ;;  %v2641_v11 = vld [vmem:[#allocation6 + $0x10] sm:$0xff] }
 0x539   :  { %2493 = vst.msk [vmem:[#allocation6 + $0x70] sm:$0xff] %vm1748_vm12, %v2476_v6  ;;  %2483 = vst.msk [vmem:[#allocation6 + $0x20] sm:$0xff] %vm1748_vm12, %v2456_v8  ;;  %2889 = vxpose.xlu0.b32.cont [3/16] (narrow) %v2641_v11, 8  ;;  %v2649_v29 = vld [vmem:[#allocation6 + $0x50] sm:$0xff] }
 0x53c   :  { %v2458_v52 = vpop.xlane.xlu1 %2457  ;;  %v2642_v33 = vld [vmem:[#allocation6 + $0x18] sm:$0xff]  ;;  %v2651_v53 = vld [vmem:[#allocation6 + $0x60] sm:$0xff] }
 0x53d   :  { %2484 = vst.msk [vmem:[#allocation6 + $0x28] sm:$0xff] %vm1748_vm12, %v2458_v52  ;;  %2890 = vxpose.xlu0.b32.cont [4/16] (narrow) %v2642_v33, 8 }
 0x540   :  { %v2462_v56 = vpop.xlane.xlu1 %2461  ;;  %v2643_v36 = vld [vmem:[#allocation6 + $0x20] sm:$0xff]  ;;  %v2653_v10 = vld [vmem:[#allocation6 + $0x70] sm:$0xff] }
 0x541   :  { %2486 = vst.msk [vmem:[#allocation6 + $0x38] sm:$0xff] %vm1748_vm12, %v2462_v56  ;;  %2891 = vxpose.xlu0.b32.cont [5/16] (narrow) %v2643_v36, 8 }
 0x544   :  { %v2464_v43 = vpop.xlane.xlu1 %2463  ;;  %v2644_v44 = vld [vmem:[#allocation6 + $0x28] sm:$0xff] }
 0x545   :  { %2487 = vst.msk [vmem:[#allocation6 + $0x40] sm:$0xff] %vm1748_vm12, %v2464_v43  ;;  %2892 = vxpose.xlu0.b32.cont [6/16] (narrow) %v2644_v44, 8 }
 0x548   :  { %v2470_v34 = vpop.xlane.xlu1 %2469  ;;  %v2646_v3 = vld [vmem:[#allocation6 + $0x38] sm:$0xff] }
 0x549   :  { %2490 = vst.msk [vmem:[#allocation6 + $0x58] sm:$0xff] %vm1748_vm12, %v2470_v34  ;;  %2893 = vxpose.xlu0.b32.cont [7/16] (narrow) %v2645_v4, 8 }
 0x54c   :  { %v2474_v62 = vpop.xlane.xlu1 %2473  ;;  %v2647_v39 = vld [vmem:[#allocation6 + $0x40] sm:$0xff] }
 0x54d   :  { %2492 = vst.msk [vmem:[#allocation6 + $0x68] sm:$0xff] %vm1748_vm12, %v2474_v62  ;;  %2894 = vxpose.xlu0.b32.cont [8/16] (narrow) %v2646_v3, 8 }
 0x550   :  { %v2478_v61 = vpop.xlane.xlu1 %2477  ;;  %v2650_v38 = vld [vmem:[#allocation6 + $0x58] sm:$0xff] }
 0x551   :  { %2494 = vst.msk [vmem:[#allocation6 + $0x78] sm:$0xff] %vm1748_vm12, %v2478_v61  ;;  %2895 = vxpose.xlu0.b32.cont [9/16] (narrow) %v2647_v39, 8 }
 0x554   :  { %v2734_v30 = vpop.permute.xlu1 %2733  ;;  %v2652_v14 = vld [vmem:[#allocation6 + $0x68] sm:$0xff] }
 0x555   :  { %v2757_v13 = vmul.f32 %v4484_v51, %v2734_v30  ;;  %2896 = vxpose.xlu0.b32.cont [10/16] (narrow) %v2648_v63, 8 }
 0x557   :  { %v2774_v0 = vmul.f32 %v4537_v49, %v2757_v13 }
 0x558   :  { %v2654_v49 = vld [vmem:[#allocation6 + $0x78] sm:$0xff] }
 0x559   :  { %v2790_v27 = vadd.f32 %v2774_v0, %v4202_v35  ;;  %2897 = vxpose.xlu0.b32.cont [11/16] (narrow) %v2649_v29, 8 }
 0x55b   :  { %v3184_v31 = vmul.f32 -1.442695, %v2790_v27 }
 0x55d   :  { %3839 = vpow2.f32 %v3184_v31  ;;  %2898 = vxpose.xlu0.b32.cont [12/16] (narrow) %v2650_v38, 8 }
 0x55e   :  { %3841 = vrcp.f32 %v2853_v1 }
 0x561   :  { %2899 = vxpose.xlu0.b32.cont [13/16] (narrow) %v2651_v53, 8 }
 0x565   :  { %2900 = vxpose.xlu0.b32.cont [14/16] (narrow) %v2652_v14, 8 }
 0x567   :  { %v3840_v47 = vpop.eup %3839 }
 0x568   :  { %v2854_v51 = vadd.f32 1.0, %v3840_v47  ;;  %v3842_v35 = vpop.eup %3841 }
 0x569   :  { %2901 = vxpose.xlu0.b32.cont [15/16] (narrow) %v2653_v10, 8 }
 0x56a   :  { %3843 = vrcp.f32 %v2854_v51 }
 0x56d   :  { %2902 = vxpose.xlu0.b32.end [16/16] (narrow) %v2654_v49, 8 }
 0x574   :  { %v3844_v54 = vpop.eup %3843 }
 0x575   :  { %v3496_v55 = vpack.c.bf16 %v3844_v54, %v3842_v35 }
 0x577   :  { %3497 = vmatpush3.bf16.msra.mxu1 %v3496_v55 }
 0x585   :  { %v3003_v46 = vpop.xlane.xlu1 %3002 }
 0x586   :  { %v3004_v18 = vrot.slane %v3003_v46, 4 }
 0x588   :  { %v3005_v42 = vadd.f32 %v3004_v18, %v3003_v46 }
 0x58a   :  { %v3006_v60 = vrot.slane %v3005_v42, 2 }
 0x58c   :  { %v3007_v5 = vadd.f32 %v3006_v60, %v3005_v42 }
 0x58e   :  { %v3008_v2 = vrot.slane %v3007_v5, 1 }
 0x590   :  { %v3009_v59 = vadd.f32 %v3008_v2, %v3007_v5 }
 0x592   :  { %3498 = vpush %v3009_v59 }
 0x5b1   :  { %v2903_v7 = vpop.trf.xlu0 }
 0x5b2   :  { %3424 = vmatmul.mubr.f32.vlgmr.msra.gmra.mrb[16].mxu1 %v2903_v7 }
 0x5c3   :  { %s3499_s27 = spop %3498 }
 0x5c4   :  { %v3011_v32 = vstv %s3499_s27 }
 0x5c5   :  { %v3012_v19 = vmul.f32 0.015625, %v3011_v32 }
 0x5c7   :  { %3845 = vtanh.f32 %v3012_v19 }
 0x5d1   :  { %v3846_v16 = vpop.eup %3845 }
 0x5d2   :  { %v3014_v23 = vmul.f32 0.015625, %v3846_v16 }
 0x685   :  { %v2985_v12 = vpop.f32.mrb[16].mxu1 }
 0x686   :  { %v2989_v9 = vmul.f32 0.015625, %v2985_v12  ;;  %v3425_v25 = vpop.f32.mrb[17].mxu1 }
 0x688   :  { %3847 = vtanh.f32 %v2989_v9 }
 0x692   :  { %v3848_v17 = vpop.eup %3847 }
 0x693   :  { %v3015_v50 = vmul.f32 %v3848_v17, %v3014_v23 }
 0x695   :  { %3849 = vtanh.f32 %v3015_v50 }
 0x69f   :  { %v3850_v45 = vpop.eup %3849 }
 0x6a0   :  { %v3018_v40 = vmul.f32 %v3850_v45, %v3017_v41 }
 0x6a2   :  { %v3019_v24 = vadd.f32 %v4616_v21, %v3018_v40 }
 0x6a4   :  { %3020 = vst [vmem:[#allocation9] sm:$0x1] %v3019_v24 }
 0x6a5   :  { %3876 = shalt.err (!%p3873_p9)
}
 0x6a6   :  { %s3877_s8 = scalar_lea.hbm %s4661_s4, 16 }
 0x6a7   :  { %p3878_p10 = scmp.ne.s32.totalorder %s4661_s4, %s3877_s8  ;;  %p3881_p11 = scmp.lt.u32.totalorder %s3877_s8, %s4661_s4 }
 0x6a9   :  { %p3883_p12 = pnand %p3881_p11, %p3878_p10 }
 0x6ab   :  { %3886 = shalt.err (!%p3883_p12)
}
 0x6ac   :  { %3030 = dma.vmem_to_hbm [thread:$0]  %s3028_s29, 16, %s4661_s4, [#allocation10]  }
 0x6ad   :  { %3889 = dma.done.wait [#allocation10], 16  }
 0x6ae   :  { %3890 = vsyncadd [#allocation10], 4294967280 }
 0x6af   :  { %3034 = vsyncpa [#allocation10], 1 }

</bundles_post_ra>
